<compile_context>
chip_gen: v7x
topology: tpu7x:2x2x1
jax: 0.10.0
libtpu: 0.0.40
codegen_flags: <defaults>
</compile_context>

<pallas_src>
import functools

import jax
import jax.numpy as jnp
from jax.experimental import pallas as pl
from jax.experimental.pallas import tpu as pltpu

_LANE = 128
_SUBLANE = 8


def _round_up(x, m):
    return ((x + m - 1) // m) * m


def _pad_rows(x, target_rows):
    return jnp.pad(x, ((0, target_rows - x.shape[0]), (0, 0)))


def _pick_tile(m, max_tile, min_steps=2):
    """Row-tile: multiple of 8, capped, and yielding >= min_steps grid steps
    so both v7x TensorCores get work and DMA/compute pipelining stays alive."""
    tile = _round_up(max(1, -(-m // min_steps)), _SUBLANE)
    return max(_SUBLANE, min(max_tile, tile))


# ----------------------------------------------------------------------------
# Kernel 1: packed point-wise projections (mlp_v + q/k/v/upfeat + identity).
# ----------------------------------------------------------------------------
def _fused_proj_kernel(x_ref, w1_ref, b1_ref, v2w_ref, v2b_ref, w2_ref, b2_ref,
                       o_ref, *, dim, in_dim, s1w):
    x = x_ref[...]                                           # (tm, 3*in_dim) bf16
    # Stage 1: one packed matmul -> [q | k | u | h_pre | vs | pad] (s1w lanes).
    s1 = jnp.dot(x, w1_ref[...], preferred_element_type=jnp.float32) + b1_ref[...]

    # MLP_Res tail: vfeat = Linear(ReLU(h_pre)) + shortcut(vs already biased).
    h = jnp.maximum(s1[:, 3 * dim:3 * dim + in_dim], 0.0)
    vs = s1[:, 3 * dim + in_dim:3 * dim + 2 * in_dim]
    vfeat = (jnp.dot(h.astype(v2w_ref.dtype), v2w_ref[...],
                     preferred_element_type=jnp.float32)
             + v2b_ref[...] + vs)

    # Stage 3: one packed matmul -> [v | identity_proj | pad] (vid lanes).
    vid = (jnp.dot(vfeat.astype(w2_ref.dtype), w2_ref[...],
                   preferred_element_type=jnp.float32) + b2_ref[...])

    # Two lane-dense, 128-aligned stores (no masked vst).
    o_ref[:, :s1w] = s1.astype(o_ref.dtype)
    o_ref[:, s1w:] = vid.astype(o_ref.dtype)


def fused_projection(x, weights, *, dim, in_dim, s1w, out_w, tile_m):
    mpad, in_w = x.shape
    grid = (mpad // tile_m,)
    in_specs = ([pl.BlockSpec((tile_m, in_w), lambda i: (i, 0))]
                + [pl.BlockSpec(w.shape, lambda i: (0, 0)) for w in weights])
    out_spec = pl.BlockSpec((tile_m, out_w), lambda i: (i, 0))
    kernel = functools.partial(_fused_proj_kernel, dim=dim, in_dim=in_dim,
                               s1w=s1w)
    return pl.pallas_call(
        kernel,
        grid=grid,
        in_specs=in_specs,
        out_specs=out_spec,
        out_shape=jax.ShapeDtypeStruct((mpad, out_w), jnp.float32),
        compiler_params=pltpu.CompilerParams(
            dimension_semantics=("parallel",),
            vmem_limit_bytes=48 * 1024 * 1024),
    )(x, *weights)


# ----------------------------------------------------------------------------
# Kernel 2: fused pos_mlp + attn_mlp (all heads) + softmax + aggregation +
#           per-head linear_end + identity add.
# ----------------------------------------------------------------------------
def _upsample_attn_kernel(slab_ref, idn_ref, w1_ref, b1_ref, w2_ref, b2_ref,
                          wa_ref, ba_ref, wc_ref, bc_ref, we_ref, be_ref,
                          o_ref, *, kk, up_factor, dim, out_dim):
    tm = o_ref.shape[0]
    slab = slab_ref[...]                                     # (tm*kk, 128) bf16
    hin = slab[:, 0:dim].astype(jnp.float32)                 # qk_rel + uf_rel
    valin = slab[:, dim:2 * dim].astype(jnp.float32)         # g_v + uf_rel
    pr = slab[:, 2 * dim:2 * dim + 3].astype(jnp.float32)    # pos_rel

    # pos_mlp layer 1 (Linear(3,Hp) + folded eval-mode BN + ReLU).
    # Depth-3 contraction stays on the VPU instead of wasting an MXU pass.
    w1 = w1_ref[...]
    h1 = (pr[:, 0:1] * w1[0:1, :] + pr[:, 1:2] * w1[1:2, :]
          + pr[:, 2:3] * w1[2:3, :] + b1_ref[...])
    h1 = jnp.maximum(h1, 0.0)
    pe = (jnp.dot(h1.astype(w2_ref.dtype), w2_ref[...],
                  preferred_element_type=jnp.float32) + b2_ref[...])

    # attn_mlp first stage (Linear + folded BN + ReLU).
    h = pe + hin
    a = jnp.maximum(
        jnp.dot(h.astype(wa_ref.dtype), wa_ref[...],
                preferred_element_type=jnp.float32) + ba_ref[...], 0.0)

    # All up_factor ConvTranspose heads fused into one wide matmul.
    logits = (jnp.dot(a.astype(wc_ref.dtype), wc_ref[...],
                      preferred_element_type=jnp.float32) + bc_ref[...])

    # value = gathered v + upfeat_rel (precomputed) + pos_embedding.
    val = (valin + pe).reshape(tm, kk, dim)

    # Softmax over the neighbor axis (Softmax(dim=-2)), heads on lanes, f32.
    logits = logits.reshape(tm, kk, up_factor * dim)
    mx = jnp.max(logits, axis=1, keepdims=True)
    e = jnp.exp(logits - mx)
    inv = pl.reciprocal(jnp.sum(e, axis=1, keepdims=True), approx=True)
    attn = e * inv                                           # (tm, kk, up*dim)

    # Per-head aggregation + shared linear_end + identity add.  No lane
    # duplication of val/idn and no zero-heavy block-diagonal matmul.
    idn = idn_ref[...]                                       # (tm, out_dim) f32
    pieces = []
    for u in range(up_factor):
        attn_u = attn[:, :, u * dim:(u + 1) * dim]
        agg_u = jnp.sum(attn_u * val, axis=1)                # (tm, dim)
        res_u = (jnp.dot(agg_u.astype(we_ref.dtype), we_ref[...],
                         preferred_element_type=jnp.float32) + be_ref[...])
        pieces.append(idn + res_u)
    pad = o_ref.shape[1] - up_factor * out_dim
    if pad:
        pieces.append(jnp.zeros((tm, pad), jnp.float32))
    # Single lane-dense (128-multiple) store.
    o_ref[...] = jnp.concatenate(pieces, axis=-1).astype(o_ref.dtype)


def upsample_attention(slab, idp, weights, *, kk, up_factor, dim, out_dim,
                       tile_m, out_pad):
    mpad = idp.shape[0]
    slab_w = slab.shape[1]
    rows_per_tile = tile_m * kk
    grid = (mpad // tile_m,)
    hp = weights[0].shape[1]
    ah = weights[4].shape[1]
    updim = up_factor * dim

    in_specs = ([pl.BlockSpec((rows_per_tile, slab_w), lambda i: (i, 0)),
                 pl.BlockSpec((tile_m, idp.shape[1]), lambda i: (i, 0))]
                + [pl.BlockSpec(w.shape, lambda i: (0, 0)) for w in weights])
    out_spec = pl.BlockSpec((tile_m, out_pad), lambda i: (i, 0))

    # Advisory cost estimate helps XLA overlap the surrounding knn/gather ops.
    n_rows = mpad * kk
    flops = int(n_rows * (2 * 3 * hp + 2 * hp * dim + 2 * dim * ah
                          + 2 * ah * updim + 8 * updim)
                + mpad * up_factor * 2 * dim * out_dim)
    transcendentals = int(n_rows * updim + mpad * updim)
    bytes_accessed = int(2 * n_rows * slab_w
                         + 4 * mpad * (idp.shape[1] + out_pad)
                         + sum(int(w.size) * w.dtype.itemsize for w in weights))
    cost = pl.CostEstimate(flops=flops, transcendentals=transcendentals,
                           bytes_accessed=bytes_accessed)

    kernel = functools.partial(_upsample_attn_kernel, kk=kk,
                               up_factor=up_factor, dim=dim, out_dim=out_dim)
    return pl.pallas_call(
        kernel,
        grid=grid,
        in_specs=in_specs,
        out_specs=out_spec,
        out_shape=jax.ShapeDtypeStruct((mpad, out_pad), jnp.float32),
        compiler_params=pltpu.CompilerParams(
            dimension_semantics=("parallel",),
            vmem_limit_bytes=48 * 1024 * 1024),
        cost_estimate=cost,
    )(slab, idp, *weights)


# ----------------------------------------------------------------------------
# Parameter setup / glue
# ----------------------------------------------------------------------------
def fold_bn(w, b, bn, eps=1e-5):
    """Fold eval-mode BatchNorm (per-channel affine) into preceding Linear."""
    gamma, beta, mean, var = bn
    s = gamma / jnp.sqrt(var + eps)
    return w * s[None, :], b * s + (beta - mean * s)


def init_params(key, in_dim, dim, out_dim, pos_hidden_dim, attn_hidden,
                up_factor):
    keys = jax.random.split(key, 64)
    it = iter(keys)

    def w(shape, scale=0.1):
        return scale * jax.random.normal(next(it), shape, jnp.float32)

    # nn.Linear weights stored already transposed to [in, out].
    return dict(
        v1_w=w((2 * in_dim, in_dim)), v1_b=w((in_dim,)),
        v2_w=w((in_dim, in_dim)), v2_b=w((in_dim,)),
        vs_w=w((2 * in_dim, in_dim)), vs_b=w((in_dim,)),
        q_w=w((in_dim, dim)), q_b=w((dim,)),
        k_w=w((in_dim, dim)), k_b=w((dim,)),
        v_w=w((in_dim, dim)), v_b=w((dim,)),
        u_w=w((in_dim, dim)), u_b=w((dim,)),
        p1_w=w((3, pos_hidden_dim)), p1_b=w((pos_hidden_dim,)),
        # TODO(synk): BatchNorm2d wrapper implemented in eval mode
        # (gamma, beta, running_mean, running_var), folded into prior Linear.
        p_bn=(1.0 + w((pos_hidden_dim,)), w((pos_hidden_dim,)),
              w((pos_hidden_dim,)), 1.0 + jnp.abs(w((pos_hidden_dim,)))),
        p2_w=w((pos_hidden_dim, dim)), p2_b=w((dim,)),
        a1_w=w((dim, attn_hidden)), a1_b=w((attn_hidden,)),
        a_bn=(1.0 + w((attn_hidden,)), w((attn_hidden,)),
              w((attn_hidden,)), 1.0 + jnp.abs(w((attn_hidden,)))),
        # ConvTranspose2d weight [Cin, Cout, up, 1] stored as [up, Cin, Cout].
        ct_w=w((up_factor, attn_hidden, dim)), ct_b=w((dim,)),
        end_w=w((dim, out_dim)), end_b=w((out_dim,)),
        id_w=w((in_dim, out_dim)), id_b=w((out_dim,)),
    )


def knn_and_gather(pos, feats, n_knn):
    """idx of k nearest neighbors (self included) + gather helper."""
    # TODO(synk): for large N replace the O(N^2) distance matrix + XLA gathers
    # with a scalar-prefetch-driven Pallas gather streaming into the kernel.
    d2 = jnp.sum((pos[:, :, None, :] - pos[:, None, :, :]) ** 2, axis=-1)
    _, idx = jax.lax.top_k(-d2, n_knn)            # [B, N, K]
    b_idx = jnp.arange(pos.shape[0])[:, None, None]
    return [f[b_idx, idx] for f in feats]         # each [B, N, K, C]


@functools.partial(jax.jit,
                   static_argnames=("n_knn", "up_factor", "proj_tile",
                                    "attn_tile"))
def upsample_transformer_forward(params, pos, key_f, query_f, upfeat,
                                 *, n_knn, up_factor,
                                 proj_tile=512, attn_tile=512):
    B, N, in_dim = key_f.shape
    dim = params["q_w"].shape[1]
    out_dim = params["end_w"].shape[1]
    M = B * N
    f32, bf16 = jnp.float32, jnp.bfloat16

    def r1(b):
        return jnp.asarray(b, f32)[None, :]

    # --- kernel 1: packed mlp_v + q/k/u/v/identity projections ---------------
    tile_p = _pick_tile(M, proj_tile)
    mpad_p = _round_up(M, tile_p)
    x = jnp.concatenate([key_f.reshape(M, in_dim),
                         query_f.reshape(M, in_dim),
                         upfeat.reshape(M, in_dim)], axis=-1)
    x = _pad_rows(x, mpad_p).astype(bf16)

    # Stage-1 block weight: [key|qry|upf] -> [q | k | u | h_pre | vs], padded
    # to a 128-lane multiple so the result is a single aligned slab.
    zdd = jnp.zeros((in_dim, dim), f32)
    zdi = jnp.zeros((in_dim, in_dim), f32)
    w1p = jnp.concatenate([
        jnp.concatenate([zdd, params["k_w"], zdd,
                         params["v1_w"][:in_dim], params["vs_w"][:in_dim]], 1),
        jnp.concatenate([params["q_w"], zdd, zdd,
                         params["v1_w"][in_dim:], params["vs_w"][in_dim:]], 1),
        jnp.concatenate([zdd, zdd, params["u_w"], zdi, zdi], 1),
    ], axis=0)
    s1w_raw = 3 * dim + 2 * in_dim
    s1w = _round_up(s1w_raw, _LANE)
    w1p = jnp.pad(w1p, ((0, 0), (0, s1w - s1w_raw))).astype(bf16)
    b1p = jnp.pad(jnp.concatenate([params["q_b"], params["k_b"], params["u_b"],
                                   params["v1_b"], params["vs_b"]]),
                  (0, s1w - s1w_raw))[None, :].astype(f32)

    # Stage-3 packed weight: vfeat -> [v | identity], padded to 128 lanes.
    vid_raw = dim + out_dim
    vid_w = _round_up(vid_raw, _LANE)
    w2p = jnp.pad(jnp.concatenate([params["v_w"], params["id_w"]], 1),
                  ((0, 0), (0, vid_w - vid_raw))).astype(bf16)
    b2p = jnp.pad(jnp.concatenate([params["v_b"], params["id_b"]]),
                  (0, vid_w - vid_raw))[None, :].astype(f32)
    v2w = params["v2_w"].astype(bf16)
    v2b = r1(params["v2_b"])

    fused = fused_projection(
        x, (w1p, b1p, v2w, v2b, w2p, b2p),
        dim=dim, in_dim=in_dim, s1w=s1w, out_w=s1w + vid_w, tile_m=tile_p)[:M]
    q_p = fused[:, 0 * dim:1 * dim].reshape(B, N, dim)
    k_p = fused[:, 1 * dim:2 * dim].reshape(B, N, dim)
    u_p = fused[:, 2 * dim:3 * dim].reshape(B, N, dim)
    v_p = fused[:, s1w:s1w + dim].reshape(B, N, dim)
    identity_proj = fused[:, s1w + dim:s1w + dim + out_dim]        # [M, out]

    # --- knn + neighbor gathers (data-dependent; plain JAX glue) -------------
    g_pos, g_k, g_u, g_v = knn_and_gather(pos, [pos, k_p, u_p, v_p], n_knn)
    pos_rel = pos[:, :, None, :] - g_pos
    uf_rel = u_p[:, :, None, :] - g_u
    h_in = (q_p[:, :, None, :] - g_k) + uf_rel        # qk_rel + upfeat_rel
    val_in = g_v + uf_rel                             # value (minus pos_emb)

    # --- kernel 2: one packed per-neighbor slab ------------------------------
    tile_a = _pick_tile(M, attn_tile)
    mpad_a = _round_up(M, tile_a)
    slab_raw = 2 * dim + 3
    slab_w = _round_up(slab_raw, _LANE)
    slab = jnp.concatenate([h_in.reshape(M * n_knn, dim),
                            val_in.reshape(M * n_knn, dim),
                            pos_rel.reshape(M * n_knn, 3)], axis=-1)
    slab = jnp.pad(slab, ((0, (mpad_a - M) * n_knn),
                          (0, slab_w - slab_raw))).astype(bf16)
    idp = _pad_rows(identity_proj, mpad_a)

    # Fold eval-mode BNs; merge ConvTranspose heads into one wide weight.
    w1f, b1f = fold_bn(params["p1_w"], params["p1_b"], params["p_bn"])
    waf, baf = fold_bn(params["a1_w"], params["a1_b"], params["a_bn"])
    ah = waf.shape[1]
    wc_all = jnp.transpose(params["ct_w"], (1, 0, 2)).reshape(ah,
                                                              up_factor * dim)
    bc_all = jnp.tile(params["ct_b"], up_factor)

    attn_weights = (w1f.astype(f32), r1(b1f),
                    params["p2_w"].astype(bf16), r1(params["p2_b"]),
                    waf.astype(bf16), r1(baf),
                    wc_all.astype(bf16), r1(bc_all),
                    params["end_w"].astype(bf16), r1(params["end_b"]))

    out_pad = _round_up(up_factor * out_dim, _LANE)
    out = upsample_attention(slab, idp, attn_weights,
                             kk=n_knn, up_factor=up_factor, dim=dim,
                             out_dim=out_dim, tile_m=tile_a, out_pad=out_pad)

    out = out[:M, :up_factor * out_dim].reshape(B, N, up_factor, out_dim)
    return out.reshape(B, N * up_factor, out_dim)


# ----------------------------------------------------------------------------
# Pure-JAX reference (for correctness check only)
# ----------------------------------------------------------------------------
def reference_forward(params, pos, key_f, query_f, upfeat, *, n_knn, up_factor,
                      eps=1e-5):
    hp = jax.lax.Precision.HIGHEST
    lin = lambda x, w, b: jnp.dot(x, w, precision=hp) + b
    bn = lambda x, p: (x - p[2]) / jnp.sqrt(p[3] + eps) * p[0] + p[1]

    B, N, _ = key_f.shape
    kq = jnp.concatenate([key_f, query_f], -1)
    h = jnp.maximum(lin(kq, params["v1_w"], params["v1_b"]), 0.0)
    value_feat = (lin(h, params["v2_w"], params["v2_b"])
                  + lin(kq, params["vs_w"], params["vs_b"]))
    identity = value_feat
    k_p = lin(key_f, params["k_w"], params["k_b"])
    q_p = lin(query_f, params["q_w"], params["q_b"])
    v_p = lin(value_feat, params["v_w"], params["v_b"])
    u_p = lin(upfeat, params["u_w"], params["u_b"])

    g_pos, g_k, g_u, g_v = knn_and_gather(pos, [pos, k_p, u_p, v_p], n_knn)
    pos_rel = pos[:, :, None, :] - g_pos
    pe = lin(jnp.maximum(bn(lin(pos_rel, params["p1_w"], params["p1_b"]),
                            params["p_bn"]), 0.0),
             params["p2_w"], params["p2_b"])
    qk_rel = q_p[:, :, None, :] - g_k
    uf_rel = u_p[:, :, None, :] - g_u
    a = jnp.maximum(bn(lin(pe + qk_rel + uf_rel,
                           params["a1_w"], params["a1_b"]), params["a_bn"]),
                    0.0)
    logits = jnp.einsum("bnkc,ucd->bnukd", a, params["ct_w"],
                        precision=hp) + params["ct_b"]
    Bh, Nh, U, K, D = logits.shape
    attn = jax.nn.softmax(logits.reshape(Bh, Nh * U, K, D), axis=-2)
    value = g_v + pe + uf_rel
    value_up = jnp.repeat(value, up_factor, axis=1)
    agg = jnp.sum(attn * value_up, axis=2)
    residual = lin(agg, params["end_w"], params["end_b"])
    identity = lin(identity, params["id_w"], params["id_b"])
    identity = jnp.repeat(identity, up_factor, axis=1)
    return identity + residual


# ----------------------------------------------------------------------------
if __name__ == "__main__":
    B, N = 2, 16
    in_dim, dim, out_dim = 16, 32, 32
    n_knn, up_factor = 8, 2
    pos_hidden_dim, attn_hidden_multiplier = 32, 4

    root = jax.random.PRNGKey(0)
    kp, kpos, kkey, kq, ku = jax.random.split(root, 5)
    params = init_params(kp, in_dim, dim, out_dim, pos_hidden_dim,
                         dim * attn_hidden_multiplier, up_factor)

    pos = jax.random.normal(kpos, (B, N, 3), jnp.float32)
    key_feat = jax.random.normal(kkey, (B, N, in_dim), jnp.float32)
    query_feat = jax.random.normal(kq, (B, N, in_dim), jnp.float32)
    upfeat = jax.random.normal(ku, (B, N, in_dim), jnp.float32)

    out = upsample_transformer_forward(params, pos, key_feat, query_feat,
                                       upfeat, n_knn=n_knn,
                                       up_factor=up_factor)
    out = jax.block_until_ready(out)
    assert out.shape == (B, N * up_factor, out_dim), out.shape

    ref = reference_forward(params, pos, key_feat, query_feat, upfeat,
                            n_knn=n_knn, up_factor=up_factor)
    max_err = float(jnp.max(jnp.abs(out - ref)))
    if not bool(jnp.allclose(out, ref, rtol=5e-2, atol=5e-2)):
        raise AssertionError(f"kernel mismatch vs reference, max_err={max_err}")

    print("KERNEL_OK")
</pallas_src>

<mosaic_0001>
module attributes {stable_mosaic.version = 11 : i64} {
  func.func @_fused_proj_kernel(%arg0: i32, %arg1: memref<16x48xbf16, #tpu.memory_space<vmem>>, %arg2: memref<48x128xbf16, #tpu.memory_space<vmem>>, %arg3: memref<1x128xf32, #tpu.memory_space<vmem>>, %arg4: memref<16x16xbf16, #tpu.memory_space<vmem>>, %arg5: memref<1x16xf32, #tpu.memory_space<vmem>>, %arg6: memref<16x128xbf16, #tpu.memory_space<vmem>>, %arg7: memref<1x128xf32, #tpu.memory_space<vmem>>, %arg8: memref<16x256xf32, #tpu.memory_space<vmem>>) attributes {dimension_semantics = [#tpu.dimension_semantics<parallel>], iteration_bounds = array<i64: 2>, scalar_prefetch = 0 : i64, scratch_operands = 0 : i64, tpu.core_type = #tpu.core_type<tc>, window_params = [{transform_indices = @transform_0, window_bounds = array<i64: 16, 48>}, {pipeline_mode = #tpu.pipeline_mode<synchronous>, transform_indices = @transform_1, window_bounds = array<i64: 48, 128>}, {pipeline_mode = #tpu.pipeline_mode<synchronous>, transform_indices = @transform_2, window_bounds = array<i64: 1, 128>}, {pipeline_mode = #tpu.pipeline_mode<synchronous>, transform_indices = @transform_3, window_bounds = array<i64: 16, 16>}, {pipeline_mode = #tpu.pipeline_mode<synchronous>, transform_indices = @transform_4, window_bounds = array<i64: 1, 16>}, {pipeline_mode = #tpu.pipeline_mode<synchronous>, transform_indices = @transform_5, window_bounds = array<i64: 16, 128>}, {pipeline_mode = #tpu.pipeline_mode<synchronous>, transform_indices = @transform_6, window_bounds = array<i64: 1, 128>}, {transform_indices = @transform_7, window_bounds = array<i64: 16, 256>}]} {
    %c0 = arith.constant 0 : index
    %c0_0 = arith.constant 0 : index
    %0 = vector.load %arg1[%c0, %c0_0] : memref<16x48xbf16, #tpu.memory_space<vmem>>, vector<16x48xbf16>
    %c0_1 = arith.constant 0 : index
    %c0_2 = arith.constant 0 : index
    %1 = vector.load %arg2[%c0_1, %c0_2] : memref<48x128xbf16, #tpu.memory_space<vmem>>, vector<48x128xbf16>
    %cst = arith.constant dense<0.000000e+00> : vector<16x128xf32>
    %2 = tpu.matmul %0, %1, %cst {dimension_numbers = #tpu.dot_dimension_numbers<[1], [0], [0], [1], [0, 0, 1, 1], [], []>} : vector<16x48xbf16>, vector<48x128xbf16>, vector<16x128xf32> -> vector<16x128xf32>
    %c0_3 = arith.constant 0 : index
    %c0_4 = arith.constant 0 : index
    %3 = vector.load %arg3[%c0_3, %c0_4] : memref<1x128xf32, #tpu.memory_space<vmem>>, vector<1x128xf32>
    %4 = vector.broadcast %3 : vector<1x128xf32> to vector<16x128xf32>
    %5 = arith.addf %2, %4 : vector<16x128xf32>
    %6 = vector.extract_strided_slice %5 {offsets = [0, 96], sizes = [16, 16], strides = [1, 1]} : vector<16x128xf32> to vector<16x16xf32>
    %cst_5 = arith.constant 0.000000e+00 : f32
    %7 = vector.broadcast %cst_5 : f32 to vector<16x16xf32>
    %8 = arith.maximumf %6, %7 : vector<16x16xf32>
    %9 = vector.extract_strided_slice %5 {offsets = [0, 112], sizes = [16, 16], strides = [1, 1]} : vector<16x128xf32> to vector<16x16xf32>
    %10 = arith.truncf %8 : vector<16x16xf32> to vector<16x16xbf16>
    %c0_6 = arith.constant 0 : index
    %c0_7 = arith.constant 0 : index
    %11 = vector.load %arg4[%c0_6, %c0_7] : memref<16x16xbf16, #tpu.memory_space<vmem>>, vector<16x16xbf16>
    %cst_8 = arith.constant dense<0.000000e+00> : vector<16x16xf32>
    %12 = tpu.matmul %10, %11, %cst_8 {dimension_numbers = #tpu.dot_dimension_numbers<[1], [0], [0], [1], [0, 0, 1, 1], [], []>} : vector<16x16xbf16>, vector<16x16xbf16>, vector<16x16xf32> -> vector<16x16xf32>
    %c0_9 = arith.constant 0 : index
    %c0_10 = arith.constant 0 : index
    %13 = vector.load %arg5[%c0_9, %c0_10] : memref<1x16xf32, #tpu.memory_space<vmem>>, vector<1x16xf32>
    %14 = vector.broadcast %13 : vector<1x16xf32> to vector<16x16xf32>
    %15 = arith.addf %12, %14 : vector<16x16xf32>
    %16 = arith.addf %15, %9 : vector<16x16xf32>
    %17 = arith.truncf %16 : vector<16x16xf32> to vector<16x16xbf16>
    %c0_11 = arith.constant 0 : index
    %c0_12 = arith.constant 0 : index
    %18 = vector.load %arg6[%c0_11, %c0_12] : memref<16x128xbf16, #tpu.memory_space<vmem>>, vector<16x128xbf16>
    %cst_13 = arith.constant dense<0.000000e+00> : vector<16x128xf32>
    %19 = tpu.matmul %17, %18, %cst_13 {dimension_numbers = #tpu.dot_dimension_numbers<[1], [0], [0], [1], [0, 0, 1, 1], [], []>} : vector<16x16xbf16>, vector<16x128xbf16>, vector<16x128xf32> -> vector<16x128xf32>
    %c0_14 = arith.constant 0 : index
    %c0_15 = arith.constant 0 : index
    %20 = vector.load %arg7[%c0_14, %c0_15] : memref<1x128xf32, #tpu.memory_space<vmem>>, vector<1x128xf32>
    %21 = vector.broadcast %20 : vector<1x128xf32> to vector<16x128xf32>
    %22 = arith.addf %19, %21 : vector<16x128xf32>
    %c0_16 = arith.constant 0 : index
    %c0_17 = arith.constant 0 : index
    %23 = vector.load %arg8[%c0_16, %c0_17] : memref<16x256xf32, #tpu.memory_space<vmem>>, vector<16x128xf32>
    tpu.vector_store %arg8[%c0_16, %c0_17], %5 {strides = array<i32>} : memref<16x256xf32, #tpu.memory_space<vmem>>, vector<16x128xf32>,
    %c0_18 = arith.constant 0 : index
    %c128 = arith.constant 128 : index
    %24 = vector.load %arg8[%c0_18, %c128] : memref<16x256xf32, #tpu.memory_space<vmem>>, vector<16x128xf32>
    tpu.vector_store %arg8[%c0_18, %c128], %22 {strides = array<i32>} : memref<16x256xf32, #tpu.memory_space<vmem>>, vector<16x128xf32>,
    return
  }
  func.func @transform_0(%arg0: i32) -> (i32, i32) {
    %c0_i32 = arith.constant 0 : i32
    %c0_i32_0 = arith.constant 0 : i32
    return %arg0, %c0_i32 : i32, i32
  }
  func.func @transform_1(%arg0: i32) -> (i32, i32) {
    %c0_i32 = arith.constant 0 : i32
    %c0_i32_0 = arith.constant 0 : i32
    %c0_i32_1 = arith.constant 0 : i32
    return %c0_i32, %c0_i32_0 : i32, i32
  }
  func.func @transform_2(%arg0: i32) -> (i32, i32) {
    %c0_i32 = arith.constant 0 : i32
    %c0_i32_0 = arith.constant 0 : i32
    %c0_i32_1 = arith.constant 0 : i32
    return %c0_i32, %c0_i32_0 : i32, i32
  }
  func.func @transform_3(%arg0: i32) -> (i32, i32) {
    %c0_i32 = arith.constant 0 : i32
    %c0_i32_0 = arith.constant 0 : i32
    %c0_i32_1 = arith.constant 0 : i32
    return %c0_i32, %c0_i32_0 : i32, i32
  }
  func.func @transform_4(%arg0: i32) -> (i32, i32) {
    %c0_i32 = arith.constant 0 : i32
    %c0_i32_0 = arith.constant 0 : i32
    %c0_i32_1 = arith.constant 0 : i32
    return %c0_i32, %c0_i32_0 : i32, i32
  }
  func.func @transform_5(%arg0: i32) -> (i32, i32) {
    %c0_i32 = arith.constant 0 : i32
    %c0_i32_0 = arith.constant 0 : i32
    %c0_i32_1 = arith.constant 0 : i32
    return %c0_i32, %c0_i32_0 : i32, i32
  }
  func.func @transform_6(%arg0: i32) -> (i32, i32) {
    %c0_i32 = arith.constant 0 : i32
    %c0_i32_0 = arith.constant 0 : i32
    %c0_i32_1 = arith.constant 0 : i32
    return %c0_i32, %c0_i32_0 : i32, i32
  }
  func.func @transform_7(%arg0: i32) -> (i32, i32) {
    %c0_i32 = arith.constant 0 : i32
    %c0_i32_0 = arith.constant 0 : i32
    return %arg0, %c0_i32 : i32, i32
  }
}

module attributes {stable_mosaic.version = 11 : i64} {
  func.func @_upsample_attn_kernel(%arg0: i32, %arg1: memref<128x128xbf16, #tpu.memory_space<vmem>>, %arg2: memref<16x32xf32, #tpu.memory_space<vmem>>, %arg3: memref<3x32xf32, #tpu.memory_space<vmem>>, %arg4: memref<1x32xf32, #tpu.memory_space<vmem>>, %arg5: memref<32x32xbf16, #tpu.memory_space<vmem>>, %arg6: memref<1x32xf32, #tpu.memory_space<vmem>>, %arg7: memref<32x128xbf16, #tpu.memory_space<vmem>>, %arg8: memref<1x128xf32, #tpu.memory_space<vmem>>, %arg9: memref<128x64xbf16, #tpu.memory_space<vmem>>, %arg10: memref<1x64xf32, #tpu.memory_space<vmem>>, %arg11: memref<32x32xbf16, #tpu.memory_space<vmem>>, %arg12: memref<1x32xf32, #tpu.memory_space<vmem>>, %arg13: memref<16x128xf32, #tpu.memory_space<vmem>>) attributes {dimension_semantics = [#tpu.dimension_semantics<parallel>], iteration_bounds = array<i64: 2>, scalar_prefetch = 0 : i64, scratch_operands = 0 : i64, tpu.core_type = #tpu.core_type<tc>, window_params = [{transform_indices = @transform_0, window_bounds = array<i64: 128, 128>}, {transform_indices = @transform_1, window_bounds = array<i64: 16, 32>}, {pipeline_mode = #tpu.pipeline_mode<synchronous>, transform_indices = @transform_2, window_bounds = array<i64: 3, 32>}, {pipeline_mode = #tpu.pipeline_mode<synchronous>, transform_indices = @transform_3, window_bounds = array<i64: 1, 32>}, {pipeline_mode = #tpu.pipeline_mode<synchronous>, transform_indices = @transform_4, window_bounds = array<i64: 32, 32>}, {pipeline_mode = #tpu.pipeline_mode<synchronous>, transform_indices = @transform_5, window_bounds = array<i64: 1, 32>}, {pipeline_mode = #tpu.pipeline_mode<synchronous>, transform_indices = @transform_6, window_bounds = array<i64: 32, 128>}, {pipeline_mode = #tpu.pipeline_mode<synchronous>, transform_indices = @transform_7, window_bounds = array<i64: 1, 128>}, {pipeline_mode = #tpu.pipeline_mode<synchronous>, transform_indices = @transform_8, window_bounds = array<i64: 128, 64>}, {pipeline_mode = #tpu.pipeline_mode<synchronous>, transform_indices = @transform_9, window_bounds = array<i64: 1, 64>}, {pipeline_mode = #tpu.pipeline_mode<synchronous>, transform_indices = @transform_10, window_bounds = array<i64: 32, 32>}, {pipeline_mode = #tpu.pipeline_mode<synchronous>, transform_indices = @transform_11, window_bounds = array<i64: 1, 32>}, {transform_indices = @transform_12, window_bounds = array<i64: 16, 128>}]} {
    %c0 = arith.constant 0 : index
    %c0_0 = arith.constant 0 : index
    %0 = vector.load %arg1[%c0, %c0_0] : memref<128x128xbf16, #tpu.memory_space<vmem>>, vector<128x128xbf16>
    %1 = vector.extract_strided_slice %0 {offsets = [0, 0], sizes = [128, 32], strides = [1, 1]} : vector<128x128xbf16> to vector<128x32xbf16>
    %2 = arith.extf %1 : vector<128x32xbf16> to vector<128x32xf32>
    %3 = vector.extract_strided_slice %0 {offsets = [0, 32], sizes = [128, 32], strides = [1, 1]} : vector<128x128xbf16> to vector<128x32xbf16>
    %4 = arith.extf %3 : vector<128x32xbf16> to vector<128x32xf32>
    %5 = vector.extract_strided_slice %0 {offsets = [0, 64], sizes = [128, 3], strides = [1, 1]} : vector<128x128xbf16> to vector<128x3xbf16>
    %6 = arith.extf %5 : vector<128x3xbf16> to vector<128x3xf32>
    %c0_1 = arith.constant 0 : index
    %c0_2 = arith.constant 0 : index
    %7 = vector.load %arg3[%c0_1, %c0_2] : memref<3x32xf32, #tpu.memory_space<vmem>>, vector<3x32xf32>
    %8 = vector.extract_strided_slice %6 {offsets = [0, 0], sizes = [128, 1], strides = [1, 1]} : vector<128x3xf32> to vector<128x1xf32>
    %9 = vector.extract_strided_slice %7 {offsets = [0, 0], sizes = [1, 32], strides = [1, 1]} : vector<3x32xf32> to vector<1x32xf32>
    %10 = vector.broadcast %8 : vector<128x1xf32> to vector<128x32xf32>
    %11 = vector.broadcast %9 : vector<1x32xf32> to vector<128x32xf32>
    %12 = arith.mulf %10, %11 : vector<128x32xf32>
    %13 = vector.extract_strided_slice %6 {offsets = [0, 1], sizes = [128, 1], strides = [1, 1]} : vector<128x3xf32> to vector<128x1xf32>
    %14 = vector.extract_strided_slice %7 {offsets = [1, 0], sizes = [1, 32], strides = [1, 1]} : vector<3x32xf32> to vector<1x32xf32>
    %15 = vector.broadcast %13 : vector<128x1xf32> to vector<128x32xf32>
    %16 = vector.broadcast %14 : vector<1x32xf32> to vector<128x32xf32>
    %17 = arith.mulf %15, %16 : vector<128x32xf32>
    %18 = arith.addf %12, %17 : vector<128x32xf32>
    %19 = vector.extract_strided_slice %6 {offsets = [0, 2], sizes = [128, 1], strides = [1, 1]} : vector<128x3xf32> to vector<128x1xf32>
    %20 = vector.extract_strided_slice %7 {offsets = [2, 0], sizes = [1, 32], strides = [1, 1]} : vector<3x32xf32> to vector<1x32xf32>
    %21 = vector.broadcast %19 : vector<128x1xf32> to vector<128x32xf32>
    %22 = vector.broadcast %20 : vector<1x32xf32> to vector<128x32xf32>
    %23 = arith.mulf %21, %22 : vector<128x32xf32>
    %24 = arith.addf %18, %23 : vector<128x32xf32>
    %c0_3 = arith.constant 0 : index
    %c0_4 = arith.constant 0 : index
    %25 = vector.load %arg4[%c0_3, %c0_4] : memref<1x32xf32, #tpu.memory_space<vmem>>, vector<1x32xf32>
    %26 = vector.broadcast %25 : vector<1x32xf32> to vector<128x32xf32>
    %27 = arith.addf %24, %26 : vector<128x32xf32>
    %cst = arith.constant 0.000000e+00 : f32
    %28 = vector.broadcast %cst : f32 to vector<128x32xf32>
    %29 = arith.maximumf %27, %28 : vector<128x32xf32>
    %30 = arith.truncf %29 : vector<128x32xf32> to vector<128x32xbf16>
    %c0_5 = arith.constant 0 : index
    %c0_6 = arith.constant 0 : index
    %31 = vector.load %arg5[%c0_5, %c0_6] : memref<32x32xbf16, #tpu.memory_space<vmem>>, vector<32x32xbf16>
    %cst_7 = arith.constant dense<0.000000e+00> : vector<128x32xf32>
    %32 = tpu.matmul %30, %31, %cst_7 {dimension_numbers = #tpu.dot_dimension_numbers<[1], [0], [0], [1], [0, 0, 1, 1], [], []>} : vector<128x32xbf16>, vector<32x32xbf16>, vector<128x32xf32> -> vector<128x32xf32>
    %c0_8 = arith.constant 0 : index
    %c0_9 = arith.constant 0 : index
    %33 = vector.load %arg6[%c0_8, %c0_9] : memref<1x32xf32, #tpu.memory_space<vmem>>, vector<1x32xf32>
    %34 = vector.broadcast %33 : vector<1x32xf32> to vector<128x32xf32>
    %35 = arith.addf %32, %34 : vector<128x32xf32>
    %36 = arith.addf %35, %2 : vector<128x32xf32>
    %37 = arith.truncf %36 : vector<128x32xf32> to vector<128x32xbf16>
    %c0_10 = arith.constant 0 : index
    %c0_11 = arith.constant 0 : index
    %38 = vector.load %arg7[%c0_10, %c0_11] : memref<32x128xbf16, #tpu.memory_space<vmem>>, vector<32x128xbf16>
    %cst_12 = arith.constant dense<0.000000e+00> : vector<128x128xf32>
    %39 = tpu.matmul %37, %38, %cst_12 {dimension_numbers = #tpu.dot_dimension_numbers<[1], [0], [0], [1], [0, 0, 1, 1], [], []>} : vector<128x32xbf16>, vector<32x128xbf16>, vector<128x128xf32> -> vector<128x128xf32>
    %c0_13 = arith.constant 0 : index
    %c0_14 = arith.constant 0 : index
    %40 = vector.load %arg8[%c0_13, %c0_14] : memref<1x128xf32, #tpu.memory_space<vmem>>, vector<1x128xf32>
    %41 = vector.broadcast %40 : vector<1x128xf32> to vector<128x128xf32>
    %42 = arith.addf %39, %41 : vector<128x128xf32>
    %cst_15 = arith.constant 0.000000e+00 : f32
    %43 = vector.broadcast %cst_15 : f32 to vector<128x128xf32>
    %44 = arith.maximumf %42, %43 : vector<128x128xf32>
    %45 = arith.truncf %44 : vector<128x128xf32> to vector<128x128xbf16>
    %c0_16 = arith.constant 0 : index
    %c0_17 = arith.constant 0 : index
    %46 = vector.load %arg9[%c0_16, %c0_17] : memref<128x64xbf16, #tpu.memory_space<vmem>>, vector<128x64xbf16>
    %cst_18 = arith.constant dense<0.000000e+00> : vector<128x64xf32>
    %47 = tpu.matmul %45, %46, %cst_18 {dimension_numbers = #tpu.dot_dimension_numbers<[1], [0], [0], [1], [0, 0, 1, 1], [], []>} : vector<128x128xbf16>, vector<128x64xbf16>, vector<128x64xf32> -> vector<128x64xf32>
    %c0_19 = arith.constant 0 : index
    %c0_20 = arith.constant 0 : index
    %48 = vector.load %arg10[%c0_19, %c0_20] : memref<1x64xf32, #tpu.memory_space<vmem>>, vector<1x64xf32>
    %49 = vector.broadcast %48 : vector<1x64xf32> to vector<128x64xf32>
    %50 = arith.addf %47, %49 : vector<128x64xf32>
    %51 = arith.addf %4, %35 : vector<128x32xf32>
    %52 = vector.shape_cast %51 : vector<128x32xf32> to vector<16x8x32xf32>
    %53 = vector.shape_cast %50 : vector<128x64xf32> to vector<16x8x64xf32>
    %cst_21 = arith.constant dense<0xFF800000> : vector<16x64xf32>
    %54 = vector.multi_reduction <maximumf>, %53, %cst_21 [1] : vector<16x8x64xf32> to vector<16x64xf32>
    %55 = vector.shape_cast %54 : vector<16x64xf32> to vector<16x1x64xf32>
    %56 = vector.broadcast %55 : vector<16x1x64xf32> to vector<16x8x64xf32>
    %57 = arith.subf %53, %56 : vector<16x8x64xf32>
    %58 = math.exp %57 : vector<16x8x64xf32>
    %cst_22 = arith.constant dense<0.000000e+00> : vector<16x64xf32>
    %59 = vector.multi_reduction <add>, %58, %cst_22 [1] : vector<16x8x64xf32> to vector<16x64xf32>
    %60 = vector.shape_cast %59 : vector<16x64xf32> to vector<16x1x64xf32>
    %61 = tpu.reciprocal %60 {approx = true} : vector<16x1x64xf32> -> vector<16x1x64xf32>
    %62 = vector.broadcast %61 : vector<16x1x64xf32> to vector<16x8x64xf32>
    %63 = arith.mulf %58, %62 : vector<16x8x64xf32>
    %c0_23 = arith.constant 0 : index
    %c0_24 = arith.constant 0 : index
    %64 = vector.load %arg2[%c0_23, %c0_24] : memref<16x32xf32, #tpu.memory_space<vmem>>, vector<16x32xf32>
    %65 = vector.extract_strided_slice %63 {offsets = [0, 0, 0], sizes = [16, 8, 32], strides = [1, 1, 1]} : vector<16x8x64xf32> to vector<16x8x32xf32>
    %66 = arith.mulf %65, %52 : vector<16x8x32xf32>
    %cst_25 = arith.constant dense<0.000000e+00> : vector<16x32xf32>
    %67 = vector.multi_reduction <add>, %66, %cst_25 [1] : vector<16x8x32xf32> to vector<16x32xf32>
    %68 = arith.truncf %67 : vector<16x32xf32> to vector<16x32xbf16>
    %c0_26 = arith.constant 0 : index
    %c0_27 = arith.constant 0 : index
    %69 = vector.load %arg11[%c0_26, %c0_27] : memref<32x32xbf16, #tpu.memory_space<vmem>>, vector<32x32xbf16>
    %cst_28 = arith.constant dense<0.000000e+00> : vector<16x32xf32>
    %70 = tpu.matmul %68, %69, %cst_28 {dimension_numbers = #tpu.dot_dimension_numbers<[1], [0], [0], [1], [0, 0, 1, 1], [], []>} : vector<16x32xbf16>, vector<32x32xbf16>, vector<16x32xf32> -> vector<16x32xf32>
    %c0_29 = arith.constant 0 : index
    %c0_30 = arith.constant 0 : index
    %71 = vector.load %arg12[%c0_29, %c0_30] : memref<1x32xf32, #tpu.memory_space<vmem>>, vector<1x32xf32>
    %72 = vector.broadcast %71 : vector<1x32xf32> to vector<16x32xf32>
    %73 = arith.addf %70, %72 : vector<16x32xf32>
    %74 = arith.addf %64, %73 : vector<16x32xf32>
    %75 = vector.extract_strided_slice %63 {offsets = [0, 0, 32], sizes = [16, 8, 32], strides = [1, 1, 1]} : vector<16x8x64xf32> to vector<16x8x32xf32>
    %76 = arith.mulf %75, %52 : vector<16x8x32xf32>
    %cst_31 = arith.constant dense<0.000000e+00> : vector<16x32xf32>
    %77 = vector.multi_reduction <add>, %76, %cst_31 [1] : vector<16x8x32xf32> to vector<16x32xf32>
    %78 = arith.truncf %77 : vector<16x32xf32> to vector<16x32xbf16>
    %c0_32 = arith.constant 0 : index
    %c0_33 = arith.constant 0 : index
    %79 = vector.load %arg11[%c0_32, %c0_33] : memref<32x32xbf16, #tpu.memory_space<vmem>>, vector<32x32xbf16>
    %cst_34 = arith.constant dense<0.000000e+00> : vector<16x32xf32>
    %80 = tpu.matmul %78, %79, %cst_34 {dimension_numbers = #tpu.dot_dimension_numbers<[1], [0], [0], [1], [0, 0, 1, 1], [], []>} : vector<16x32xbf16>, vector<32x32xbf16>, vector<16x32xf32> -> vector<16x32xf32>
    %c0_35 = arith.constant 0 : index
    %c0_36 = arith.constant 0 : index
    %81 = vector.load %arg12[%c0_35, %c0_36] : memref<1x32xf32, #tpu.memory_space<vmem>>, vector<1x32xf32>
    %82 = vector.broadcast %81 : vector<1x32xf32> to vector<16x32xf32>
    %83 = arith.addf %80, %82 : vector<16x32xf32>
    %84 = arith.addf %64, %83 : vector<16x32xf32>
    %cst_37 = arith.constant 0.000000e+00 : f32
    %85 = vector.broadcast %cst_37 : f32 to vector<16x64xf32>
    %86 = tpu.concatenate %74, %84, %85 in 1 : vector<16x32xf32>, vector<16x32xf32>, vector<16x64xf32> -> vector<16x128xf32>
    %c0_38 = arith.constant 0 : index
    %c0_39 = arith.constant 0 : index
    %87 = vector.load %arg13[%c0_38, %c0_39] : memref<16x128xf32, #tpu.memory_space<vmem>>, vector<16x128xf32>
    tpu.vector_store %arg13[%c0_38, %c0_39], %86 {strides = array<i32>} : memref<16x128xf32, #tpu.memory_space<vmem>>, vector<16x128xf32>,
    return
  }
  func.func @transform_0(%arg0: i32) -> (i32, i32) {
    %c0_i32 = arith.constant 0 : i32
    %c0_i32_0 = arith.constant 0 : i32
    return %arg0, %c0_i32 : i32, i32
  }
  func.func @transform_1(%arg0: i32) -> (i32, i32) {
    %c0_i32 = arith.constant 0 : i32
    %c0_i32_0 = arith.constant 0 : i32
    return %arg0, %c0_i32 : i32, i32
  }
  func.func @transform_2(%arg0: i32) -> (i32, i32) {
    %c0_i32 = arith.constant 0 : i32
    %c0_i32_0 = arith.constant 0 : i32
    %c0_i32_1 = arith.constant 0 : i32
    return %c0_i32, %c0_i32_0 : i32, i32
  }
  func.func @transform_3(%arg0: i32) -> (i32, i32) {
    %c0_i32 = arith.constant 0 : i32
    %c0_i32_0 = arith.constant 0 : i32
    %c0_i32_1 = arith.constant 0 : i32
    return %c0_i32, %c0_i32_0 : i32, i32
  }
  func.func @transform_4(%arg0: i32) -> (i32, i32) {
    %c0_i32 = arith.constant 0 : i32
    %c0_i32_0 = arith.constant 0 : i32
    %c0_i32_1 = arith.constant 0 : i32
    return %c0_i32, %c0_i32_0 : i32, i32
  }
  func.func @transform_5(%arg0: i32) -> (i32, i32) {
    %c0_i32 = arith.constant 0 : i32
    %c0_i32_0 = arith.constant 0 : i32
    %c0_i32_1 = arith.constant 0 : i32
    return %c0_i32, %c0_i32_0 : i32, i32
  }
  func.func @transform_6(%arg0: i32) -> (i32, i32) {
    %c0_i32 = arith.constant 0 : i32
    %c0_i32_0 = arith.constant 0 : i32
    %c0_i32_1 = arith.constant 0 : i32
    return %c0_i32, %c0_i32_0 : i32, i32
  }
  func.func @transform_7(%arg0: i32) -> (i32, i32) {
    %c0_i32 = arith.constant 0 : i32
    %c0_i32_0 = arith.constant 0 : i32
    %c0_i32_1 = arith.constant 0 : i32
    return %c0_i32, %c0_i32_0 : i32, i32
  }
  func.func @transform_8(%arg0: i32) -> (i32, i32) {
    %c0_i32 = arith.constant 0 : i32
    %c0_i32_0 = arith.constant 0 : i32
    %c0_i32_1 = arith.constant 0 : i32
    return %c0_i32, %c0_i32_0 : i32, i32
  }
  func.func @transform_9(%arg0: i32) -> (i32, i32) {
    %c0_i32 = arith.constant 0 : i32
    %c0_i32_0 = arith.constant 0 : i32
    %c0_i32_1 = arith.constant 0 : i32
    return %c0_i32, %c0_i32_0 : i32, i32
  }
  func.func @transform_10(%arg0: i32) -> (i32, i32) {
    %c0_i32 = arith.constant 0 : i32
    %c0_i32_0 = arith.constant 0 : i32
    %c0_i32_1 = arith.constant 0 : i32
    return %c0_i32, %c0_i32_0 : i32, i32
  }
  func.func @transform_11(%arg0: i32) -> (i32, i32) {
    %c0_i32 = arith.constant 0 : i32
    %c0_i32_0 = arith.constant 0 : i32
    %c0_i32_1 = arith.constant 0 : i32
    return %c0_i32, %c0_i32_0 : i32, i32
  }
  func.func @transform_12(%arg0: i32) -> (i32, i32) {
    %c0_i32 = arith.constant 0 : i32
    %c0_i32_0 = arith.constant 0 : i32
    return %arg0, %c0_i32 : i32, i32
  }
}

</mosaic_0001>

<bundles_post_ra>
// kernel: neg.1
= control target key start
LH: loop header
LB: loop body
LE: loop exit
PB: predicated region body
PF: predicated region fallthrough
CT: control target
= control target key end

     0   :  { %s72_s0 = inlined_call_operand.vmem [shape: f32[2,16,16], index: 0, kind: input, shape index: {}]   ;;  %s73_s1 = inlined_call_operand.vmem [shape: f32[2,16,16], index: 1, kind: output, shape index: {}]  }
   0x1   :  { %v2_v0 = vld [vmem:[%s72_s0] sm:$0xff]  ;;  %v32_v1 = vld [vmem:[%s72_s0 + $0x10] sm:$0xff]  ;;  %v34_v2 = vld [vmem:[%s72_s0 + $0x8] sm:$0xff] }
   0x2   :  { %v5_v3 = vxor.u32 2147483648, %v2_v0  ;;  %v12_v4 = vxor.u32 2147483648, %v32_v1  ;;  %v20_v5 = vxor.u32 2147483648, %v34_v2  ;;  %v36_v6 = vld [vmem:[%s72_s0 + $0x18] sm:$0xff] }
   0x3   :  { %v28_v7 = vxor.u32 2147483648, %v36_v6 }
   0x4   :  { %7 = vst [vmem:[%s73_s1] sm:$0xff] %v5_v3  ;;  %33 = vst [vmem:[%s73_s1 + $0x10] sm:$0xff] %v12_v4 }
   0x5   :  { %35 = vst [vmem:[%s73_s1 + $0x8] sm:$0xff] %v20_v5  ;;  %37 = vst [vmem:[%s73_s1 + $0x18] sm:$0xff] %v28_v7 }

// kernel: upsample_transformer_forward.2
= control target key start
LH: loop header
LB: loop body
LE: loop exit
PB: predicated region body
PF: predicated region fallthrough
CT: control target
= control target key end

     0   :  { %s691_s24 = smov 0   ;;  %s743_s0 = inlined_call_operand.vmem [shape: bf16[32,48], index: 0, kind: input, shape index: {}]   ;;  %s744_s1 = inlined_call_operand.vmem [shape: bf16[48,128], index: 1, kind: input, shape index: {}]   ;;  %s745_s2 = inlined_call_operand.vmem [shape: f32[1,128], index: 2, kind: input, shape index: {}]   ;;  %s746_s3 = inlined_call_operand.vmem [shape: bf16[16,16], index: 3, kind: input, shape index: {}]   ;;  %s747_s4 = inlined_call_operand.vmem [shape: f32[1,16], index: 4, kind: input, shape index: {}]   ;;  %s748_s5 = inlined_call_operand.vmem [shape: bf16[16,128], index: 5, kind: input, shape index: {}]   ;;  %s749_s6 = inlined_call_operand.vmem [shape: f32[1,128], index: 6, kind: input, shape index: {}]   ;;  %s750_s7 = inlined_call_operand.vmem [shape: f32[32,256], index: 7, kind: output, shape index: {}]  }
   0x1 LB: > { %s566_s25 = sadd.s32 4294967295, %s645_s24   ;;  %p570_p0 = scmp.ge.s32.totalorder %s645_s24, 1  ;;  %s645_s24 = sphi %s691_s24, %s17_s24  }
   0x2   : > { %p238_p1 = scmp.lt.s32.totalorder %s645_s24, 3 }
   0x4   : > { %p239_p2 = pnand %p570_p0, %p238_p1 }
   0x5   : > { %v633_v0 = vld [vmem:[%s744_s1] sm:$0xff] (!%p239_p2)   ;;  %v647_v1 = vmov (!%p239_p2), 0.0   ;;  %v634_v2 = vld [vmem:[%s744_s1 + $0x8] sm:$0xff] (!%p239_p2)   ;;  %vm648_vm0 = vmmov (!%p239_p2), 0   ;;  %s571_s30 = sshll.u32 (!%p239_p2), %s566_s25, 1  ;;  %v635_v3 = vld [vmem:[%s744_s1 + $0x10] sm:$0xff] (!%p239_p2)  }
   0x6   : > { %242 = sbr.rel (%p239_p2) target bundleno = 790 (0x316), region = 48  ;;  %599 = vmatprep.subr.bf16.mxu0 (!%p239_p2), %v647_v1  ;;  %609 = vmatprep.subr.bf16.mxu1 (!%p239_p2), %v647_v1  ;;  %p272_p3 = scmp.lt.s32.totalorder (!%p239_p2), %s571_s30, 3  ;;  %vm323_vm1 = vcmask (!%p239_p2), 392192   ;;  %v637_v5 = vld [vmem:[%s746_s3] sm:$0xff] (!%p239_p2)   ;;  %vm389_vm2 = vcmask (!%p239_p2), 130048  }
   0x7   : > { %600 = vmatpush3.bf16.msra.mxu0 (!%p239_p2), %v633_v0  ;;  %605 = vmatprep.mubr.msk.bf16.mxu0 (!%p239_p2), %vm648_vm0, %v647_v1  ;;  %v576_v6 = vld [vmem:[%s745_s2] ss:$0 sm:$0xff] (!%p239_p2)  ;;  %s649_s22 = smov (!%p239_p2), 16   ;;  %s650_s23 = smov (!%p239_p2), 32  }
   0x8   : > { %601 = vmatprep.subr.bf16.mxu0 (!%p239_p2), %v647_v1  ;;  %611 = vmatprep.mubr.msk.bf16.mxu1 (!%p239_p2), %vm648_vm0, %v647_v1  ;;  %v638_v17 = vld [vmem:[%s748_s5] sm:$0xff] (!%p239_p2)  }
   0x9   : > { %610 = vmatpush3.bf16.msra.mxu1 (!%p239_p2), %v637_v5  ;;  %v582_v18 = vld [vmem:[%s747_s4] ss:$0 sm:$0xff] (!%p239_p2) }
   0xa   : > { %615 = vmatprep.subr.bf16.mxu1 (!%p239_p2), %v647_v1  ;;  %v585_v30 = vld [vmem:[%s749_s6] ss:$0 sm:$0xff] (!%p239_p2) }
   0xb   : > { %602 = vmatpush3.bf16.msra.mxu0 (!%p239_p2), %v634_v2 }
   0xc   : > { %603 = vmatprep.subr.bf16.mxu0 (!%p239_p2), %v647_v1 }
   0xd   : > { %s752_s30 = smov (!%p272_p3, %s571_s30), 3 }
   0xe   : > { %s572_s10 = sshll.u32 %s752_s30, 2  ;;  %s590_s16 = sshll.u32 %s752_s30, 4 }
   0xf   : > { %s275_s13 = scalar_lea.vmem %s743_s0, %s572_s10  ;;  %604 = vmatpush3.bf16.msra.mxu0 %v635_v3  ;;  %s722_s21 = scalar_lea.vmem %s750_s7, %s590_s16 }
  0x10   : > { %v636_v4 = vld [vmem:[%s275_s13] sm:$0xff]  }
  0x12   : > { %606 = vmatmul.mubr.msk.bf16.vlgmr.msra.gmra.mrb[0].mxu0 %vm323_vm1, %v636_v4 }
  0xe5   : > { %v361_v7 = vpop.f32.mrb[0].mxu0 }
  0xe6   : > { %v362_v8 = vadd.f32 %v576_v6, %v361_v7  ;;  %v607_v9 = vpop.f32.mrb[1].mxu0 }
  0xe7   : > { %v364_v10 = vpop.f32.mrb[2].mxu0 }
  0xe8   : > { %504 = vst [vmem:[%s722_s21] sm:$0xff] %v362_v8  ;;  %v365_v11 = vadd.f32 %v576_v6, %v364_v10  ;;  %v608_v12 = vpop.f32.mrb[3].mxu0  ;;  %v368_v13 = vmax.f32 %v362_v8, 0.0 }
  0xea   : > { %505 = vst [vmem:[%s722_s21 + $0x10] sm:$0xff] %v365_v11  ;;  %438 = vrot.lane.b32.xlu1 %v365_v11, %s649_s22  ;;  %v369_v14 = vmax.f32 %v365_v11, 0.0 }
  0xec   : > { %v370_v15 = vpack.c.bf16 %v369_v14, %v368_v13 }
  0xee   : > { %381 = vrot.lane.b32.xlu0 %v370_v15, %s650_s23 }
  0xf2   : > { %436 = vrot.lane.b32.xlu0 %v362_v8, %s649_s22 }
 0x15c   : > { %v439_v25 = vpop.permute.xlu1 %438 }
 0x160   : > { %v382_v16 = vpop.permute.xlu0 %381 }
 0x161   : > { %612 = vmatmul.mubr.msk.bf16.vlgmr.msra.gmra.mrb[0].mxu1 %vm389_vm2, %v382_v16 }
 0x162   : > { %617 = vmatprep.mubr.msk.bf16.mxu1 %vm648_vm0, %v647_v1  ;;  %616 = vmatpush3.bf16.msra.mxu1 %v638_v17 }
 0x164   : > { %v437_v26 = vpop.permute.xlu0 %436 }
 0x234   : > { %v427_v19 = vpop.f32.mrb[0].mxu1 }
 0x235   : > { %v428_v20 = vadd.f32 %v582_v18, %v427_v19  ;;  %v613_v21 = vpop.f32.mrb[1].mxu1 }
 0x236   : > { %v430_v22 = vpop.f32.mrb[2].mxu1 }
 0x237   : > { %v431_v23 = vadd.f32 %v582_v18, %v430_v22  ;;  %v614_v24 = vpop.f32.mrb[3].mxu1  ;;  %v442_v27 = vadd.f32 %v437_v26, %v428_v20 }
 0x239   : > { %v443_v28 = vadd.f32 %v439_v25, %v431_v23 }
 0x23b   : > { %v444_v29 = vpack.c.bf16 %v443_v28, %v442_v27 }
 0x23d   : > { %618 = vmatmul.mubr.msk.bf16.vlgmr.msra.gmra.mrb[4].mxu1 %vm389_vm2, %v444_v29 }
 0x310   : > { %v497_v31 = vpop.f32.mrb[4].mxu1 }
 0x311   : > { %v498_v32 = vadd.f32 %v585_v30, %v497_v31  ;;  %v619_v33 = vpop.f32.mrb[5].mxu1 }
 0x312   : > { %v500_v34 = vpop.f32.mrb[6].mxu1 }
 0x313   : > { %506 = vst [vmem:[%s722_s21 + $0x8] sm:$0xff] %v498_v32  ;;  %v501_v35 = vadd.f32 %v585_v30, %v500_v34  ;;  %v620_v36 = vpop.f32.mrb[7].mxu1 }
 0x315   : > { %507 = vst [vmem:[%s722_s21 + $0x18] sm:$0xff] %v501_v35 }
 0x316 PF: > { %s17_s24 = sadd.s32 1, %s645_s24  }
 0x317   : > { %p14_p4 = scmp.ge.s32.totalorder %s17_s24, 4  }
 0x319   :  { %16 = sbr.rel (!%p14_p4) target bundleno = 1 (0x1), region = 78 }

// kernel: tile.8
= control target key start
LH: loop header
LB: loop body
LE: loop exit
PB: predicated region body
PF: predicated region fallthrough
CT: control target
= control target key end

     0   :  { %s22_s0 = inlined_call_operand.vmem [shape: f32[32], index: 0, kind: input, shape index: {}]   ;;  %s23_s1 = inlined_call_operand.vmem [shape: f32[2,32], index: 1, kind: output, shape index: {}]  }
   0x1   :  { %v4_v0 = vld [vmem:[%s22_s0] ss:$0 sm:$0xff] }
   0x2   :  { %5 = vst [vmem:[%s23_s1] sm:$0x3] %v4_v0 }

// kernel: tile.9
= control target key start
LH: loop header
LB: loop body
LE: loop exit
PB: predicated region body
PF: predicated region fallthrough
CT: control target
= control target key end

     0   :  { %vm7_vm0 = vcmask 261120   ;;  %vm13_vm1 = vcmask 523520   ;;  %s39_s0 = inlined_call_operand.vmem [shape: f32[2,32], index: 0, kind: input, shape index: {}]   ;;  %s40_s1 = inlined_call_operand.vmem [shape: f32[1,64], index: 1, kind: output, shape index: {}]  }
   0x1   :  { %v4_v0 = vld [vmem:[%s39_s0] sm:$0x3]  ;;  %s22_s0 = smov 32  }
   0x2   :  { %5 = vst [vmem:[#allocation1] sm:$0x3] %v4_v0 }
   0x9   :  { %v10_v1 = vld [vmem:[#allocation1 + $0x1] sm:$0x1]   ;;  %v6_v2 = vld [vmem:[#allocation1] sm:$0x1]  }
   0xa   :  { %11 = vrot.lane.b32.xlu0 %v10_v1, %s22_s0  ;;  %8 = vst.msk [vmem:[#allocation0] sm:$0x1] %vm7_vm0, %v6_v2  }
  0x7c   :  { %v12_v3 = vpop.permute.xlu0 %11  }
  0x7d   :  { %14 = vst.msk [vmem:[#allocation0] sm:$0x1] %vm13_vm1, %v12_v3  }
  0x84   :  { %v18_v4 = vld [vmem:[#allocation0] sm:$0x1] }
  0x85   :  { %20 = vst [vmem:[%s40_s1] sm:$0x1] %v18_v4 }

// kernel: upsample_transformer_forward.3
= control target key start
LH: loop header
LB: loop body
LE: loop exit
PB: predicated region body
PF: predicated region fallthrough
CT: control target
= control target key end

     0   :  { %s2913_s21 = smov 0   ;;  %s3720_s0 = inlined_call_operand.vmem [shape: bf16[256,128], index: 0, kind: input, shape index: {}]   ;;  %s3721_s1 = inlined_call_operand.vmem [shape: f32[32,32], index: 1, kind: input, shape index: {}]   ;;  %s3722_s2 = inlined_call_operand.vmem [shape: f32[3,32], index: 2, kind: input, shape index: {}]   ;;  %s3723_s3 = inlined_call_operand.vmem [shape: f32[1,32], index: 3, kind: input, shape index: {}]   ;;  %s3724_s4 = inlined_call_operand.vmem [shape: bf16[32,32], index: 4, kind: input, shape index: {}]   ;;  %s3725_s5 = inlined_call_operand.vmem [shape: f32[1,32], index: 5, kind: input, shape index: {}]   ;;  %s3726_s6 = inlined_call_operand.vmem [shape: bf16[32,128], index: 6, kind: input, shape index: {}]   ;;  %s3727_s7 = inlined_call_operand.vmem [shape: f32[1,128], index: 7, kind: input, shape index: {}]   ;;  %s3728_s8 = inlined_call_operand.vmem [shape: bf16[128,64], index: 8, kind: input, shape index: {}]   ;;  %s3729_s9 = inlined_call_operand.vmem [shape: f32[1,64], index: 9, kind: input, shape index: {}]   ;;  %s3730_s10 = inlined_call_operand.vmem [shape: bf16[32,32], index: 10, kind: input, shape index: {}]   ;;  %s3731_s11 = inlined_call_operand.vmem [shape: f32[1,32], index: 11, kind: input, shape index: {}]   ;;  %s3732_s12 = inlined_call_operand.vmem [shape: f32[32,128], index: 12, kind: output, shape index: {}]  }
   0x1 LB: > { %s2365_s22 = sadd.s32 4294967295, %s2839_s21   ;;  %p2369_p0 = scmp.ge.s32.totalorder %s2839_s21, 1  ;;  %s2839_s21 = sphi %s2913_s21, %s22_s21  }
   0x2   : > { %p374_p1 = scmp.lt.s32.totalorder %s2839_s21, 3 }
   0x4   : > { %p375_p2 = pnand %p2369_p0, %p374_p1 }
   0x5   : > { %s2370_s23 = sshll.u32 (!%p375_p2), %s2365_s22, 4  ;;  %v2841_v0 = vmov (!%p375_p2), 64   ;;  %v2842_v12 = vmov (!%p375_p2), 65   ;;  %v2843_v17 = vmov (!%p375_p2), 66   ;;  %v2753_v22 = vld [vmem:[%s3724_s4] sm:$0xff] (!%p375_p2)   ;;  %v2754_v25 = vld [vmem:[%s3724_s4 + $0x8] sm:$0xff] (!%p375_p2)   ;;  %v553_v37 = vlaneseq (!%p375_p2) }
   0x6   : > { %378 = sbr.rel (%p375_p2) target bundleno = 1464 (0x5b8), region = 68  ;;  %2627 = vset.pattern.permute.xlu1 (!%p375_p2), %v2841_v0  ;;  %2615 = vset.pattern.permute.xlu0 (!%p375_p2), %v2841_v0  ;;  %p422_p3 = scmp.lt.s32.totalorder (!%p375_p2), %s2370_s23, 31  ;;  %v472_v42 = vld [vmem:[%s3722_s2] sm:$0x7] (!%p375_p2)  ;;  %vm843_vm0 = vcmask (!%p375_p2), 261120   ;;  %vm1405_vm1 = vcmask (!%p375_p2), 523264  }
   0x7   : > { %2496 = vmatprep.subr.bf16.mxu0 (!%p375_p2), %v2753_v22  ;;  %v554_v38 = vshrl.u32 (!%p375_p2), %v553_v37, 7  ;;  %s2844_s26 = smov (!%p375_p2), 32   ;;  %s2845_s28 = smov (!%p375_p2), 96   ;;  %vm2847_vm2 = vmmov (!%p375_p2), 0   ;;  %vm2059_vm3 = vcmask (!%p375_p2), 523520   ;;  %vm1963_vm4 = vcmask (!%p375_p2), 1041409  }
   0x8   : > { %2497 = vmatpush3.bf16.msra.mxu0 (!%p375_p2), %v2753_v22  ;;  %vm1965_vm5 = vcmask (!%p375_p2), 1042434   ;;  %vm1967_vm6 = vcmask (!%p375_p2), 1043459   ;;  %vm1969_vm7 = vcmask (!%p375_p2), 1044484   ;;  %vm1971_vm8 = vcmask (!%p375_p2), 1045509   ;;  %s2372_s25 = sshll.u32 (!%p375_p2), %s2365_s22, 1 }
   0x9   : > { %2498 = vmatprep.subr.bf16.mxu0 (!%p375_p2), %v2754_v25  ;;  %v555_v41 = vsub.s32 (!%p375_p2), 0, %v554_v38  ;;  %v639_v43 = vsub.s32 (!%p375_p2), 1, %v554_v38  ;;  %v739_v49 = vsub.s32 (!%p375_p2), 2, %v554_v38  ;;  %vm1973_vm9 = vcmask (!%p375_p2), 1046534   ;;  %p428_p4 = scmp.lt.s32.totalorder (!%p375_p2), %s2372_s25, 3 }
   0xa   : > { %vm1975_vm10 = vcmask (!%p375_p2), 1047559  }
   0xb   : > { %v3000_v46 = vrot.slane (!%p375_p2), %v472_v42, %v555_v41  ;;  %v3002_v50 = vrot.slane (!%p375_p2), %v472_v42, %v639_v43  ;;  %v3008_v57 = vrot.slane (!%p375_p2), %v472_v42, %v739_v49 }
   0xc   : > { %2499 = vmatpush3.bf16.msra.mxu0 (!%p375_p2), %v2754_v25 }
   0xd   : > { %s3734_s23 = smov (!%p422_p3, %s2370_s23), 31  ;;  %s3736_s25 = smov (!%p428_p4, %s2372_s25), 3 }
   0xe   : > { %s2371_s24 = sshll.u32 %s3734_s23, 2 }
   0xf   : > { %s2928_s27 = scalar_lea.vmem %s3720_s0, %s2371_s24 }
  0x10   : > { %v2447_v1 = vld [vmem:[%s2928_s27 + $0x8] sm:$0xff]   ;;  %v2416_v2 = vld [vmem:[%s2928_s27] sm:$0xff]   ;;  %v2449_v7 = vld [vmem:[%s2928_s27 + $0x18] sm:$0xff]  }
  0x11   : > { %v2932_v3 = vunpack.c.l.bf16 %v2447_v1  ;;  %v2934_v4 = vunpack.c.h.bf16 %v2447_v1  ;;  %v2936_v5 = vunpack.c.l.bf16 %v2416_v2  ;;  %v2938_v6 = vunpack.c.h.bf16 %v2416_v2  ;;  %v2448_v13 = vld [vmem:[%s2928_s27 + $0x10] sm:$0xff]   ;;  %v2451_v19 = vld [vmem:[%s2928_s27 + $0x28] sm:$0xff]   ;;  %v2453_v24 = vld [vmem:[%s2928_s27 + $0x38] sm:$0xff]  }
  0x12   : > { %v2945_v10 = vunpack.c.l.bf16 %v2449_v7  ;;  %v2947_v11 = vunpack.c.h.bf16 %v2449_v7  ;;  %v2952_v15 = vunpack.c.l.bf16 %v2448_v13  ;;  %v2954_v16 = vunpack.c.h.bf16 %v2448_v13  ;;  %v2450_v26 = vld [vmem:[%s2928_s27 + $0x20] sm:$0xff]   ;;  %v2452_v33 = vld [vmem:[%s2928_s27 + $0x30] sm:$0xff]   ;;  %s2373_s27 = sshll.u32 %s3736_s25, 3 }
  0x13   : > { %v2628_v8 = vpack.i.bf16 %v2934_v4, %v2932_v3  ;;  %v2616_v9 = vpack.i.bf16 %v2938_v6, %v2936_v5  ;;  %v2961_v20 = vunpack.c.l.bf16 %v2451_v19  ;;  %v2963_v21 = vunpack.c.h.bf16 %v2451_v19  ;;  %s431_s30 = scalar_lea.vmem %s3721_s1, %s2373_s27  ;;  %s437_s16 = scalar_lea.vmem %s3732_s12, %s2373_s27 }
  0x14   : > { %v2658_v14 = vpack.i.bf16 %v2947_v11, %v2945_v10  ;;  %v2646_v18 = vpack.i.bf16 %v2954_v16, %v2952_v15  ;;  %v2975_v27 = vunpack.c.l.bf16 %v2453_v24  ;;  %v2977_v28 = vunpack.c.h.bf16 %v2453_v24 }
  0x15   : > { %2629 = vperm.xlu1 %2627, %v2628_v8   ;;  %2617 = vperm.xlu0 %2615, %v2616_v9   ;;  %v2708_v23 = vpack.i.bf16 %v2963_v21, %v2961_v20  ;;  %v2979_v29 = vunpack.c.l.bf16 %v2450_v26  ;;  %v2981_v30 = vunpack.c.h.bf16 %v2450_v26  ;;  %v2990_v34 = vunpack.c.l.bf16 %v2452_v33 }
  0x16   : > { %v2731_v31 = vpack.i.bf16 %v2977_v28, %v2975_v27  ;;  %v2992_v35 = vunpack.c.h.bf16 %v2452_v33 }
  0x17   : > { %v2686_v32 = vpack.i.bf16 %v2981_v30, %v2979_v29 }
  0x18   : > { %v2720_v36 = vpack.i.bf16 %v2992_v35, %v2990_v34 }
  0x19   : > { %2633 = vset.pattern.permute.xlu1 %v2842_v12  ;;  %2621 = vset.pattern.permute.xlu0 %v2842_v12 }
  0x1a   : > { %2635 = vperm.xlu1 %2633, %v2628_v8   ;;  %2623 = vperm.xlu0 %2621, %v2616_v9  }
  0x1e   : > { %2639 = vset.pattern.permute.xlu1 %v2843_v17  ;;  %2657 = vset.pattern.permute.xlu0 %v2841_v0 }
  0x1f   : > { %2641 = vperm.xlu1 %2639, %v2616_v9   ;;  %2659 = vperm.xlu0 %2657, %v2658_v14  }
  0x23   : > { %2645 = vset.pattern.permute.xlu1 %v2841_v0  ;;  %2663 = vset.pattern.permute.xlu0 %v2843_v17 }
  0x24   : > { %2647 = vperm.xlu1 %2645, %v2646_v18   ;;  %2665 = vperm.xlu0 %2663, %v2628_v8  }
  0x28   : > { %2651 = vset.pattern.permute.xlu1 %v2842_v12  ;;  %2681 = vperm.xlu0 %2663, %v2658_v14  }
  0x29   : > { %2653 = vperm.xlu1 %2651, %v2646_v18  }
  0x2c   : > { %2709 = vperm.xlu0 %2663, %v2708_v23  }
  0x2d   : > { %2670 = vperm.xlu1 %2651, %v2658_v14   ;;  %v3017_v14 = vld [vmem:[%s3723_s3] ss:$0 sm:$0xff] }
  0x30   : > { %2713 = vset.pattern.permute.xlu0 %v2841_v0 }
  0x31   : > { %2674 = vset.pattern.permute.xlu1 %v2843_v17  ;;  %2715 = vperm.xlu0 %2713, %v2708_v23  }
  0x32   : > { %2676 = vperm.xlu1 %2674, %v2646_v18  }
  0x35   : > { %2732 = vperm.xlu0 %2713, %v2731_v31  }
  0x36   : > { %2685 = vset.pattern.permute.xlu1 %v2841_v0 }
  0x37   : > { %2687 = vperm.xlu1 %2685, %v2686_v32  }
  0x39   : > { %2747 = vset.pattern.permute.xlu0 %v2843_v17 }
  0x3a   : > { %2749 = vperm.xlu0 %2747, %v2731_v31  }
  0x3b   : > { %2691 = vset.pattern.permute.xlu1 %v2842_v12 }
  0x3c   : > { %2693 = vperm.xlu1 %2691, %v2686_v32  }
  0x40   : > { %2698 = vperm.xlu1 %2691, %v2708_v23  }
  0x44   : > { %2702 = vset.pattern.permute.xlu1 %v2843_v17 }
  0x45   : > { %2704 = vperm.xlu1 %2702, %v2686_v32  }
  0x49   : > { %2719 = vset.pattern.permute.xlu1 %v2841_v0 }
  0x4a   : > { %2721 = vperm.xlu1 %2719, %v2720_v36  }
  0x4e   : > { %2725 = vset.pattern.permute.xlu1 %v2842_v12 }
  0x4f   : > { %2727 = vperm.xlu1 %2725, %v2720_v36  }
  0x53   : > { %2737 = vperm.xlu1 %2725, %v2731_v31  }
  0x57   : > { %2741 = vset.pattern.permute.xlu1 %v2843_v17 }
  0x58   : > { %2743 = vperm.xlu1 %2741, %v2720_v36  }
  0x94   : > { %v2630_v39 = vpop.permute.xlu1 %2629  ;;  %v2618_v40 = vpop.permute.xlu0 %2617 }
  0x95   : > { %v2620_v44 = vunpack.i.h.bf16 %v2618_v40  ;;  %v2619_v45 = vunpack.i.l.bf16 %v2618_v40  ;;  %v2632_v2 = vunpack.i.h.bf16 %v2630_v39  ;;  %v2631_v7 = vunpack.i.l.bf16 %v2630_v39 }
  0x97   : > { %v558_v53 = vmul.f32 %v2620_v44, %v3000_v46  ;;  %v557_v54 = vmul.f32 %v2619_v45, %v3000_v46  ;;  %v560_v23 = vmul.f32 %v2632_v2, %v3000_v46  ;;  %v559_v24 = vmul.f32 %v2631_v7, %v3000_v46 }
  0x99   : > { %v2636_v47 = vpop.permute.xlu1 %2635  ;;  %v2624_v48 = vpop.permute.xlu0 %2623 }
  0x9a   : > { %v2626_v51 = vunpack.i.h.bf16 %v2624_v48  ;;  %v2625_v52 = vunpack.i.l.bf16 %v2624_v48  ;;  %v2638_v58 = vunpack.i.h.bf16 %v2636_v47  ;;  %v2637_v59 = vunpack.i.l.bf16 %v2636_v47 }
  0x9c   : > { %v642_v55 = vmul.f32 %v2626_v51, %v3002_v50  ;;  %v641_v56 = vmul.f32 %v2625_v52, %v3002_v50  ;;  %v644_v12 = vmul.f32 %v2638_v58, %v3002_v50  ;;  %v643_v13 = vmul.f32 %v2637_v59, %v3002_v50 }
  0x9e   : > { %v2642_v60 = vpop.permute.xlu1 %2641  ;;  %v2660_v61 = vpop.permute.xlu0 %2659  ;;  %v657_v62 = vadd.f32 %v641_v56, %v557_v54  ;;  %v658_v63 = vadd.f32 %v642_v55, %v558_v53  ;;  %v659_v33 = vadd.f32 %v643_v13, %v559_v24  ;;  %v660_v36 = vadd.f32 %v644_v12, %v560_v23 }
  0x9f   : > { %v2644_v0 = vunpack.i.h.bf16 %v2642_v60  ;;  %v2643_v1 = vunpack.i.l.bf16 %v2642_v60  ;;  %v2662_v45 = vunpack.i.h.bf16 %v2660_v61  ;;  %v2661_v47 = vunpack.i.l.bf16 %v2660_v61 }
  0xa1   : > { %v742_v8 = vmul.f32 %v2644_v0, %v3008_v57  ;;  %v741_v9 = vmul.f32 %v2643_v1, %v3008_v57  ;;  %v564_v60 = vmul.f32 %v2662_v45, %v3000_v46 }
  0xa3   : > { %v757_v17 = vadd.f32 %v741_v9, %v657_v62  ;;  %v758_v18 = vadd.f32 %v742_v8, %v658_v63  ;;  %v2648_v19 = vpop.permute.xlu1 %2647  ;;  %v2666_v22 = vpop.permute.xlu0 %2665  ;;  %v563_v62 = vmul.f32 %v2661_v47, %v3000_v46 }
  0xa4   : > { %v2668_v25 = vunpack.i.h.bf16 %v2666_v22  ;;  %v2667_v26 = vunpack.i.l.bf16 %v2666_v22  ;;  %v2650_v0 = vunpack.i.h.bf16 %v2648_v19  ;;  %v2649_v1 = vunpack.i.l.bf16 %v2648_v19 }
  0xa5   : > { %v780_v31 = vadd.f32 %v3017_v14, %v757_v17  ;;  %v781_v32 = vadd.f32 %v3017_v14, %v758_v18 }
  0xa6   : > { %v744_v37 = vmul.f32 %v2668_v25, %v3008_v57  ;;  %v743_v38 = vmul.f32 %v2667_v26, %v3008_v57  ;;  %v562_v19 = vmul.f32 %v2650_v0, %v3000_v46  ;;  %v561_v24 = vmul.f32 %v2649_v1, %v3000_v46 }
  0xa7   : > { %v796_v39 = vmax.f32 %v780_v31, 0.0  ;;  %v797_v40 = vmax.f32 %v781_v32, 0.0  ;;  %v2682_v44 = vpop.permute.xlu0 %2681 }
  0xa8   : > { %v760_v41 = vadd.f32 %v744_v37, %v660_v36  ;;  %v759_v42 = vadd.f32 %v743_v38, %v659_v33  ;;  %v2654_v43 = vpop.permute.xlu1 %2653  ;;  %v2684_v52 = vunpack.i.h.bf16 %v2682_v44  ;;  %v2683_v53 = vunpack.i.l.bf16 %v2682_v44 }
  0xa9   : > { %v812_v48 = vpack.c.bf16 %v797_v40, %v796_v39  ;;  %v2656_v56 = vunpack.i.h.bf16 %v2654_v43  ;;  %v2655_v58 = vunpack.i.l.bf16 %v2654_v43 }
  0xaa   : > { %v783_v49 = vadd.f32 %v3017_v14, %v760_v41  ;;  %v782_v51 = vadd.f32 %v3017_v14, %v759_v42  ;;  %v748_v9 = vmul.f32 %v2684_v52, %v3008_v57  ;;  %v747_v12 = vmul.f32 %v2683_v53, %v3008_v57 }
  0xab   : > { %2500 = vmatprep.mubr.msk.bf16.mxu0 %vm843_vm0, %v812_v48  ;;  %v646_v13 = vmul.f32 %v2656_v56, %v3002_v50  ;;  %v645_v17 = vmul.f32 %v2655_v58, %v3002_v50  ;;  %v2710_v33 = vpop.permute.xlu0 %2709 }
  0xac   : > { %v799_v54 = vmax.f32 %v783_v49, 0.0  ;;  %v798_v55 = vmax.f32 %v782_v51, 0.0  ;;  %v2671_v59 = vpop.permute.xlu1 %2670 }
  0xad   : > { %v2673_v63 = vunpack.i.h.bf16 %v2671_v59  ;;  %v2672_v61 = vunpack.i.l.bf16 %v2671_v59  ;;  %v661_v36 = vadd.f32 %v645_v17, %v561_v24  ;;  %v662_v37 = vadd.f32 %v646_v13, %v562_v19 }
  0xae   : > { %v813_v2 = vpack.c.bf16 %v799_v54, %v798_v55 }
  0xaf   : > { %v648_v7 = vmul.f32 %v2673_v63, %v3002_v50  ;;  %v647_v8 = vmul.f32 %v2672_v61, %v3002_v50 }
  0xb0   : > { %2501 = vmatmul.mubr.msk.bf16.vlgmr.msra.gmra.mrb[0].mxu0 %vm843_vm0, %v813_v2  ;;  %v2716_v51 = vpop.permute.xlu0 %2715 }
  0xb1   : > { %v663_v18 = vadd.f32 %v647_v8, %v563_v62  ;;  %v664_v22 = vadd.f32 %v648_v7, %v564_v60  ;;  %v2677_v23 = vpop.permute.xlu1 %2676  ;;  %v2718_v56 = vunpack.i.h.bf16 %v2716_v51  ;;  %v2717_v58 = vunpack.i.l.bf16 %v2716_v51 }
  0xb2   : > { %v2679_v25 = vunpack.i.h.bf16 %v2677_v23  ;;  %v2678_v26 = vunpack.i.l.bf16 %v2677_v23  ;;  %v2712_v60 = vunpack.i.h.bf16 %v2710_v33  ;;  %v2711_v62 = vunpack.i.l.bf16 %v2710_v33 }
  0xb3   : > { %v763_v31 = vadd.f32 %v747_v12, %v663_v18  ;;  %v764_v32 = vadd.f32 %v748_v9, %v664_v22  ;;  %v568_v7 = vmul.f32 %v2718_v56, %v3000_v46  ;;  %v567_v8 = vmul.f32 %v2717_v58, %v3000_v46 }
  0xb4   : > { %v746_v38 = vmul.f32 %v2679_v25, %v3008_v57  ;;  %v745_v39 = vmul.f32 %v2678_v26, %v3008_v57  ;;  %v752_v13 = vmul.f32 %v2712_v60, %v3008_v57  ;;  %v751_v17 = vmul.f32 %v2711_v62, %v3008_v57 }
  0xb5   : > { %v786_v40 = vadd.f32 %v3017_v14, %v763_v31  ;;  %v787_v41 = vadd.f32 %v3017_v14, %v764_v32 }
  0xb6   : > { %v761_v42 = vadd.f32 %v745_v39, %v661_v36  ;;  %v762_v43 = vadd.f32 %v746_v38, %v662_v37  ;;  %v2688_v44 = vpop.permute.xlu1 %2687 }
  0xb7   : > { %v802_v48 = vmax.f32 %v786_v40, 0.0  ;;  %v803_v49 = vmax.f32 %v787_v41, 0.0  ;;  %v2690_v9 = vunpack.i.h.bf16 %v2688_v44  ;;  %v2689_v12 = vunpack.i.l.bf16 %v2688_v44 }
  0xb8   : > { %v784_v45 = vadd.f32 %v3017_v14, %v761_v42  ;;  %v785_v47 = vadd.f32 %v3017_v14, %v762_v43 }
  0xb9   : > { %v815_v59 = vpack.c.bf16 %v803_v49, %v802_v48  ;;  %v566_v31 = vmul.f32 %v2690_v9, %v3000_v46  ;;  %v565_v32 = vmul.f32 %v2689_v12, %v3000_v46  ;;  %v2733_v49 = vpop.permute.xlu0 %2732 }
  0xba   : > { %v800_v52 = vmax.f32 %v784_v45, 0.0  ;;  %v801_v53 = vmax.f32 %v785_v47, 0.0  ;;  %v2735_v62 = vunpack.i.h.bf16 %v2733_v49 }
  0xbb   : > { %v2694_v54 = vpop.permute.xlu1 %2693 }
  0xbc   : > { %v814_v55 = vpack.c.bf16 %v801_v53, %v800_v52  ;;  %v2696_v63 = vunpack.i.h.bf16 %v2694_v54  ;;  %v2695_v61 = vunpack.i.l.bf16 %v2694_v54 }
  0xbe   : > { %2504 = vmatprep.mubr.msk.bf16.mxu0 %vm843_vm0, %v814_v55  ;;  %v650_v23 = vmul.f32 %v2696_v63, %v3002_v50  ;;  %v649_v19 = vmul.f32 %v2695_v61, %v3002_v50  ;;  %v2734_v63 = vunpack.i.l.bf16 %v2733_v49 }
  0xbf   : > { %v2699_v0 = vpop.permute.xlu1 %2698  ;;  %2505 = vmatmul.mubr.msk.bf16.gmra.mrb[4].mxu0 %vm843_vm0, %v815_v59  ;;  %v2750_v59 = vpop.permute.xlu0 %2749 }
  0xc0   : > { %v2701_v1 = vunpack.i.h.bf16 %v2699_v0  ;;  %v2700_v2 = vunpack.i.l.bf16 %v2699_v0  ;;  %v665_v39 = vadd.f32 %v649_v19, %v565_v32  ;;  %v666_v40 = vadd.f32 %v650_v23, %v566_v31 }
  0xc1   : > { %v2752_v0 = vunpack.i.h.bf16 %v2750_v59 }
  0xc2   : > { %v652_v18 = vmul.f32 %v2701_v1, %v3002_v50  ;;  %v651_v22 = vmul.f32 %v2700_v2, %v3002_v50  ;;  %v2751_v1 = vunpack.i.l.bf16 %v2750_v59 }
  0xc4   : > { %v668_v24 = vadd.f32 %v652_v18, %v568_v7  ;;  %v667_v25 = vadd.f32 %v651_v22, %v567_v8  ;;  %v2705_v26 = vpop.permute.xlu1 %2704  ;;  %v572_v18 = vmul.f32 %v2735_v62, %v3000_v46  ;;  %v571_v22 = vmul.f32 %v2734_v63, %v3000_v46 }
  0xc5   : > { %v2707_v33 = vunpack.i.h.bf16 %v2705_v26  ;;  %v2706_v36 = vunpack.i.l.bf16 %v2705_v26 }
  0xc6   : > { %v767_v37 = vadd.f32 %v751_v17, %v667_v25  ;;  %v768_v38 = vadd.f32 %v752_v13, %v668_v24  ;;  %v756_v24 = vmul.f32 %v2752_v0, %v3008_v57  ;;  %v755_v25 = vmul.f32 %v2751_v1, %v3008_v57 }
  0xc7   : > { %v750_v41 = vmul.f32 %v2707_v33, %v3008_v57  ;;  %v749_v42 = vmul.f32 %v2706_v36, %v3008_v57 }
  0xc8   : > { %v790_v43 = vadd.f32 %v3017_v14, %v767_v37  ;;  %v791_v44 = vadd.f32 %v3017_v14, %v768_v38 }
  0xc9   : > { %v765_v45 = vadd.f32 %v749_v42, %v665_v39  ;;  %v766_v47 = vadd.f32 %v750_v41, %v666_v40  ;;  %v2722_v48 = vpop.permute.xlu1 %2721 }
  0xca   : > { %v806_v53 = vmax.f32 %v790_v43, 0.0  ;;  %v807_v54 = vmax.f32 %v791_v44, 0.0  ;;  %v2724_v13 = vunpack.i.h.bf16 %v2722_v48  ;;  %v2723_v17 = vunpack.i.l.bf16 %v2722_v48 }
  0xcb   : > { %v788_v51 = vadd.f32 %v3017_v14, %v765_v45  ;;  %v789_v52 = vadd.f32 %v3017_v14, %v766_v47 }
  0xcc   : > { %v817_v61 = vpack.c.bf16 %v807_v54, %v806_v53  ;;  %v570_v37 = vmul.f32 %v2724_v13, %v3000_v46  ;;  %v569_v38 = vmul.f32 %v2723_v17, %v3000_v46 }
  0xcd   : > { %v804_v55 = vmax.f32 %v788_v51, 0.0  ;;  %v805_v56 = vmax.f32 %v789_v52, 0.0 }
  0xce   : > { %v2728_v58 = vpop.permute.xlu1 %2727 }
  0xcf   : > { %v816_v60 = vpack.c.bf16 %v805_v56, %v804_v55  ;;  %v2730_v2 = vunpack.i.h.bf16 %v2728_v58  ;;  %v2729_v7 = vunpack.i.l.bf16 %v2728_v58 }
  0xd1   : > { %2508 = vmatprep.mubr.msk.bf16.mxu0 %vm843_vm0, %v816_v60  ;;  %v654_v26 = vmul.f32 %v2730_v2, %v3002_v50  ;;  %v653_v31 = vmul.f32 %v2729_v7, %v3002_v50  ;;  %v3092_v60 = vld [vmem:[%s3725_s5] ss:$0 sm:$0xff] }
  0xd2   : > { %v2738_v8 = vpop.permute.xlu1 %2737  ;;  %2509 = vmatmul.mubr.msk.bf16.gmra.mrb[8].mxu0 %vm843_vm0, %v817_v61 }
  0xd3   : > { %v2740_v9 = vunpack.i.h.bf16 %v2738_v8  ;;  %v2739_v12 = vunpack.i.l.bf16 %v2738_v8  ;;  %v669_v43 = vadd.f32 %v653_v31, %v569_v38  ;;  %v670_v44 = vadd.f32 %v654_v26, %v570_v37 }
  0xd5   : > { %v656_v23 = vmul.f32 %v2740_v9, %v3002_v50  ;;  %v655_v19 = vmul.f32 %v2739_v12, %v3002_v50 }
  0xd7   : > { %v671_v32 = vadd.f32 %v655_v19, %v571_v22  ;;  %v672_v33 = vadd.f32 %v656_v23, %v572_v18  ;;  %v2744_v36 = vpop.permute.xlu1 %2743 }
  0xd8   : > { %v2746_v39 = vunpack.i.h.bf16 %v2744_v36  ;;  %v2745_v40 = vunpack.i.l.bf16 %v2744_v36 }
  0xd9   : > { %v771_v41 = vadd.f32 %v755_v25, %v671_v32  ;;  %v772_v42 = vadd.f32 %v756_v24, %v672_v33 }
  0xda   : > { %v754_v45 = vmul.f32 %v2746_v39, %v3008_v57  ;;  %v753_v47 = vmul.f32 %v2745_v40, %v3008_v57  ;;  %v2755_v57 = vld [vmem:[%s3726_s6] sm:$0xff]  }
  0xdb   : > { %v794_v48 = vadd.f32 %v3017_v14, %v771_v41  ;;  %v795_v50 = vadd.f32 %v3017_v14, %v772_v42  ;;  %2516 = vmatprep.subr.bf16.mxu1 %v2755_v57 }
  0xdc   : > { %v769_v49 = vadd.f32 %v753_v47, %v669_v43  ;;  %v770_v51 = vadd.f32 %v754_v45, %v670_v44  ;;  %2517 = vmatpush3.bf16.msra.mxu1 %v2755_v57 }
  0xdd   : > { %v810_v53 = vmax.f32 %v794_v48, 0.0  ;;  %v811_v54 = vmax.f32 %v795_v50, 0.0 }
  0xde   : > { %v792_v52 = vadd.f32 %v3017_v14, %v769_v49  ;;  %v793_v46 = vadd.f32 %v3017_v14, %v770_v51  ;;  %v2756_v14 = vld [vmem:[%s3726_s6 + $0x8] sm:$0xff]  }
  0xdf   : > { %v819_v59 = vpack.c.bf16 %v811_v54, %v810_v53  ;;  %2518 = vmatprep.subr.bf16.mxu1 %v2756_v14 }
  0xe0   : > { %v808_v55 = vmax.f32 %v792_v52, 0.0  ;;  %v809_v56 = vmax.f32 %v793_v46, 0.0  ;;  %2519 = vmatpush3.bf16.msra.mxu1 %v2756_v14 }
  0xe2   : > { %v818_v58 = vpack.c.bf16 %v809_v56, %v808_v55 }
  0xe4   : > { %2512 = vmatprep.mubr.msk.bf16.mxu0 %vm843_vm0, %v818_v58 }
  0xe5   : > { %2513 = vmatmul.mubr.msk.bf16.gmra.mrb[12].mxu0 %vm843_vm0, %v819_v59 }
 0x183   : > { %v2502_v62 = vpop.f32.mrb[0].mxu0 }
 0x184   : > { %v911_v63 = vadd.f32 %v2502_v62, %v3092_v60  ;;  %v902_v61 = vpop.f32.mrb[1].mxu0 }
 0x185   : > { %v903_v0 = vadd.f32 %v3092_v60, %v902_v61  ;;  %v2503_v1 = vpop.f32.mrb[2].mxu0 }
 0x186   : > { %v914_v2 = vadd.f32 %v2503_v1, %v3092_v60  ;;  %1345 = vrot.lane.b32.xlu0 %v911_v63, %s2844_s26  ;;  %v905_v7 = vpop.f32.mrb[3].mxu0  ;;  %v967_v9 = vadd.f32 %v2932_v3, %v911_v63  ;;  %v2758_v1 = vld [vmem:[%s3728_s8 + $0x8] sm:$0xff]  }
 0x187   : > { %v906_v8 = vadd.f32 %v3092_v60, %v905_v7  ;;  %1341 = vrot.lane.b32.xlu1 %v903_v0, %s2844_s26  ;;  %v965_v13 = vadd.f32 %v2936_v5, %v903_v0  ;;  %v2757_v0 = vld [vmem:[%s3728_s8] sm:$0xff]  }
 0x188   : > { %v968_v12 = vadd.f32 %v2934_v4, %v914_v2  ;;  %2536 = vmatprep.subr.bf16.mxu0 %v2757_v0  ;;  %2584 = vmatprep.subr.bf16.mxu1 %v2757_v0 }
 0x189   : > { %v966_v17 = vadd.f32 %v2938_v6, %v906_v8  ;;  %2537 = vmatpush3.bf16.msra.mxu0 %v2757_v0 }
 0x18a   : > { %v982_v18 = vpack.c.bf16 %v968_v12, %v967_v9  ;;  %1347 = vrot.lane.b32.xlu0 %v914_v2, %s2844_s26  ;;  %2538 = vmatprep.subr.bf16.mxu0 %v2758_v1 }
 0x18b   : > { %1343 = vrot.lane.b32.xlu1 %v906_v8, %s2844_s26  ;;  %v981_v22 = vpack.c.bf16 %v966_v17, %v965_v13  ;;  %v2759_v13 = vld [vmem:[%s3728_s8 + $0x10] sm:$0xff]   ;;  %v2760_v17 = vld [vmem:[%s3728_s8 + $0x18] sm:$0xff]  }
 0x18d   : > { %2520 = vmatprep.mubr.msk.bf16.mxu1 %vm843_vm0, %v981_v22  ;;  %2539 = vmatpush3.bf16.msra.mxu0 %v2758_v1  ;;  %v2762_v22 = vld [vmem:[%s3728_s8 + $0x28] sm:$0xff]  }
 0x18e   : > { %2521 = vmatmul.mubr.msk.bf16.vlgmr.msra.gmra.mrb[0].mxu1 %vm843_vm0, %v982_v18  ;;  %2540 = vmatprep.subr.bf16.mxu0 %v2759_v13  ;;  %v2761_v18 = vld [vmem:[%s3728_s8 + $0x20] sm:$0xff]  }
 0x18f   : > { %2592 = vmatpush3.bf16.msra.mxu1 %v2757_v0 }
 0x190   : > { %2585 = vmatprep.subr.bf16.mxu1 %v2758_v1 }
 0x191   : > { %2541 = vmatpush3.bf16.msra.mxu0 %v2759_v13 }
 0x192   : > { %v2506_v23 = vpop.f32.mrb[4].mxu0  ;;  %2542 = vmatprep.subr.bf16.mxu0 %v2760_v17 }
 0x193   : > { %v927_v19 = vadd.f32 %v2506_v23, %v3092_v60  ;;  %v918_v24 = vpop.f32.mrb[5].mxu0  ;;  %2593 = vmatpush3.bf16.msra.mxu1 %v2758_v1  ;;  %v2763_v23 = vld [vmem:[%s3728_s8 + $0x30] sm:$0xff]  }
 0x194   : > { %v919_v25 = vadd.f32 %v3092_v60, %v918_v24  ;;  %v2507_v26 = vpop.f32.mrb[6].mxu0  ;;  %2586 = vmatprep.subr.bf16.mxu1 %v2759_v13 }
 0x195   : > { %v930_v31 = vadd.f32 %v2507_v26, %v3092_v60  ;;  %v921_v32 = vpop.f32.mrb[7].mxu0  ;;  %v971_v36 = vadd.f32 %v2945_v10, %v927_v19  ;;  %2543 = vmatpush3.bf16.msra.mxu0 %v2760_v17 }
 0x196   : > { %v922_v33 = vadd.f32 %v3092_v60, %v921_v32  ;;  %1349 = vrot.lane.b32.xlu0 %v919_v25, %s2844_s26  ;;  %v969_v38 = vadd.f32 %v2952_v15, %v919_v25  ;;  %2544 = vmatprep.subr.bf16.mxu0 %v2761_v18 }
 0x197   : > { %v972_v37 = vadd.f32 %v2947_v11, %v930_v31  ;;  %2594 = vmatpush3.bf16.msra.mxu1 %v2759_v13 }
 0x198   : > { %v970_v39 = vadd.f32 %v2954_v16, %v922_v33  ;;  %2587 = vmatprep.subr.bf16.mxu1 %v2760_v17 }
 0x199   : > { %v984_v40 = vpack.c.bf16 %v972_v37, %v971_v36  ;;  %2545 = vmatpush3.bf16.msra.mxu0 %v2761_v18 }
 0x19a   : > { %v983_v41 = vpack.c.bf16 %v970_v39, %v969_v38  ;;  %1351 = vrot.lane.b32.xlu0 %v922_v33, %s2844_s26  ;;  %2546 = vmatprep.subr.bf16.mxu0 %v2762_v22 }
 0x19b   : > { %2595 = vmatpush3.bf16.msra.mxu1 %v2760_v17 }
 0x19c   : > { %2524 = vmatprep.mubr.msk.bf16.mxu1 %vm843_vm0, %v983_v41  ;;  %2588 = vmatprep.subr.bf16.mxu1 %v2761_v18 }
 0x19d   : > { %2525 = vmatmul.mubr.msk.bf16.gmra.mrb[4].mxu1 %vm843_vm0, %v984_v40  ;;  %2547 = vmatpush3.bf16.msra.mxu0 %v2762_v22 }
 0x19e   : > { %2548 = vmatprep.subr.bf16.mxu0 %v2763_v23 }
 0x19f   : > { %2596 = vmatpush3.bf16.msra.mxu1 %v2761_v18 }
 0x1a0   : > { %2589 = vmatprep.subr.bf16.mxu1 %v2762_v22 }
 0x1a1   : > { %2549 = vmatpush3.bf16.msra.mxu0 %v2763_v23 }
 0x1a3   : > { %2597 = vmatpush3.bf16.msra.mxu1 %v2762_v22 }
 0x1a4   : > { %2590 = vmatprep.subr.bf16.mxu1 %v2763_v23 }
 0x1a5   : > { %v2510_v42 = vpop.f32.mrb[8].mxu0 }
 0x1a6   : > { %v943_v43 = vadd.f32 %v2510_v42, %v3092_v60  ;;  %v934_v44 = vpop.f32.mrb[9].mxu0 }
 0x1a7   : > { %v935_v45 = vadd.f32 %v3092_v60, %v934_v44  ;;  %v2511_v47 = vpop.f32.mrb[10].mxu0  ;;  %2598 = vmatpush3.bf16.msra.mxu1 %v2763_v23 }
 0x1a8   : > { %v946_v48 = vadd.f32 %v2511_v47, %v3092_v60  ;;  %v937_v50 = vpop.f32.mrb[11].mxu0  ;;  %1361 = vrot.lane.b32.xlu1 %v943_v43, %s2844_s26  ;;  %v975_v51 = vadd.f32 %v2961_v20, %v943_v43 }
 0x1a9   : > { %v938_v49 = vadd.f32 %v3092_v60, %v937_v50  ;;  %1357 = vrot.lane.b32.xlu0 %v935_v45, %s2844_s26  ;;  %v973_v46 = vadd.f32 %v2979_v29, %v935_v45 }
 0x1aa   : > { %v976_v52 = vadd.f32 %v2963_v21, %v946_v48 }
 0x1ab   : > { %v974_v53 = vadd.f32 %v2981_v30, %v938_v49 }
 0x1ac   : > { %v986_v54 = vpack.c.bf16 %v976_v52, %v975_v51  ;;  %1363 = vrot.lane.b32.xlu1 %v946_v48, %s2844_s26 }
 0x1ad   : > { %v985_v55 = vpack.c.bf16 %v974_v53, %v973_v46  ;;  %1353 = vrot.lane.b32.xlu0 %v927_v19, %s2844_s26  ;;  %v2764_v19 = vld [vmem:[%s3728_s8 + $0x38] sm:$0xff]  }
 0x1ae   : > { %2550 = vmatprep.subr.bf16.mxu0 %v2764_v19  ;;  %2591 = vmatprep.subr.bf16.mxu1 %v2764_v19 }
 0x1af   : > { %2528 = vmatprep.mubr.msk.bf16.mxu1 %vm843_vm0, %v985_v55  ;;  %2551 = vmatpush3.bf16.msra.mxu0 %v2764_v19 }
 0x1b0   : > { %1359 = vrot.lane.b32.xlu1 %v938_v49, %s2844_s26  ;;  %2529 = vmatmul.mubr.msk.bf16.gmra.mrb[8].mxu1 %vm843_vm0, %v986_v54 }
 0x1b1   : > { %1355 = vrot.lane.b32.xlu0 %v930_v31, %s2844_s26  ;;  %2599 = vmatpush3.bf16.msra.mxu1 %v2764_v19 }
 0x1b8   : > { %v2514_v56 = vpop.f32.mrb[12].mxu0 }
 0x1b9   : > { %v959_v58 = vadd.f32 %v2514_v56, %v3092_v60  ;;  %v950_v59 = vpop.f32.mrb[13].mxu0 }
 0x1ba   : > { %v951_v57 = vadd.f32 %v3092_v60, %v950_v59  ;;  %v2515_v14 = vpop.f32.mrb[14].mxu0 }
 0x1bb   : > { %v962_v62 = vadd.f32 %v2515_v14, %v3092_v60  ;;  %v953_v63 = vpop.f32.mrb[15].mxu0  ;;  %1369 = vrot.lane.b32.xlu1 %v959_v58, %s2844_s26  ;;  %v979_v2 = vadd.f32 %v2975_v27, %v959_v58 }
 0x1bc   : > { %v954_v61 = vadd.f32 %v3092_v60, %v953_v63  ;;  %v977_v8 = vadd.f32 %v2990_v34, %v951_v57 }
 0x1bd   : > { %v980_v7 = vadd.f32 %v2977_v28, %v962_v62 }
 0x1be   : > { %v978_v9 = vadd.f32 %v2992_v35, %v954_v61 }
 0x1bf   : > { %v988_v12 = vpack.c.bf16 %v980_v7, %v979_v2  ;;  %1365 = vrot.lane.b32.xlu1 %v951_v57, %s2844_s26 }
 0x1c0   : > { %v987_v60 = vpack.c.bf16 %v978_v9, %v977_v8 }
 0x1c2   : > { %2532 = vmatprep.mubr.msk.bf16.mxu1 %vm843_vm0, %v987_v60 }
 0x1c3   : > { %1367 = vrot.lane.b32.xlu1 %v954_v61, %s2844_s26  ;;  %2533 = vmatmul.mubr.msk.bf16.gmra.mrb[12].mxu1 %vm843_vm0, %v988_v12 }
 0x1c7   : > { %1371 = vrot.lane.b32.xlu1 %v962_v62, %s2844_s26 }
 0x1f8   : > { %v1346_v24 = vpop.permute.xlu0 %1345 }
 0x1f9   : > { %v3175_v25 = vadd.f32 %v2932_v3, %v1346_v24  ;;  %v1342_v26 = vpop.permute.xlu1 %1341 }
 0x1fa   : > { %v3180_v31 = vadd.f32 %v2936_v5, %v1342_v26 }
 0x1fb   : > { %1732 = vrot.lane.b32.xlu0 %v3175_v25, %s2845_s28 }
 0x1fc   : > { %v1348_v33 = vpop.permute.xlu0 %1347 }
 0x1fd   : > { %v1344_v32 = vpop.permute.xlu1 %1343  ;;  %v3190_v3 = vadd.f32 %v2934_v4, %v1348_v33 }
 0x1fe   : > { %v3183_v36 = vadd.f32 %v2938_v6, %v1344_v32 }
 0x1ff   : > { %1728 = vrot.lane.b32.xlu0 %v3180_v31, %s2845_s28 }
 0x200   : > { %1730 = vrot.lane.b32.xlu1 %v3183_v36, %s2845_s28 }
 0x203   : > { %1734 = vrot.lane.b32.xlu0 %v3190_v3, %s2845_s28 }
 0x208   : > { %v1350_v37 = vpop.permute.xlu0 %1349 }
 0x209   : > { %v3195_v5 = vadd.f32 %v2952_v15, %v1350_v37 }
 0x20b   : > { %1736 = vrot.lane.b32.xlu0 %v3195_v5, %s2845_s28 }
 0x20c   : > { %v1352_v6 = vpop.permute.xlu0 %1351 }
 0x20d   : > { %v3200_v38 = vadd.f32 %v2954_v16, %v1352_v6 }
 0x20f   : > { %1738 = vrot.lane.b32.xlu0 %v3200_v38, %s2845_s28 }
 0x21a   : > { %v1362_v39 = vpop.permute.xlu1 %1361 }
 0x21b   : > { %v3205_v4 = vadd.f32 %v2961_v20, %v1362_v39  ;;  %v1358_v40 = vpop.permute.xlu0 %1357 }
 0x21c   : > { %v3208_v41 = vadd.f32 %v2979_v29, %v1358_v40 }
 0x21d   : > { %1748 = vrot.lane.b32.xlu1 %v3205_v4, %s2845_s28 }
 0x21e   : > { %1744 = vrot.lane.b32.xlu0 %v3208_v41, %s2845_s28  ;;  %v1364_v15 = vpop.permute.xlu1 %1363 }
 0x21f   : > { %v3215_v16 = vadd.f32 %v2963_v21, %v1364_v15  ;;  %v1354_v42 = vpop.permute.xlu0 %1353 }
 0x220   : > { %v3218_v43 = vadd.f32 %v2945_v10, %v1354_v42 }
 0x221   : > { %1750 = vrot.lane.b32.xlu1 %v3215_v16, %s2845_s28 }
 0x222   : > { %1740 = vrot.lane.b32.xlu0 %v3218_v43, %s2845_s28  ;;  %v1360_v20 = vpop.permute.xlu1 %1359 }
 0x223   : > { %v3225_v29 = vadd.f32 %v2981_v30, %v1360_v20  ;;  %v1356_v44 = vpop.permute.xlu0 %1355 }
 0x224   : > { %v3228_v45 = vadd.f32 %v2947_v11, %v1356_v44 }
 0x225   : > { %1746 = vrot.lane.b32.xlu1 %v3225_v29, %s2845_s28 }
 0x226   : > { %1742 = vrot.lane.b32.xlu0 %v3228_v45, %s2845_s28 }
 0x22d   : > { %v1370_v10 = vpop.permute.xlu1 %1369 }
 0x22e   : > { %v3235_v21 = vadd.f32 %v2975_v27, %v1370_v10 }
 0x230   : > { %1756 = vrot.lane.b32.xlu1 %v3235_v21, %s2845_s28 }
 0x231   : > { %v1366_v47 = vpop.permute.xlu1 %1365 }
 0x232   : > { %v3240_v30 = vadd.f32 %v2990_v34, %v1366_v47  ;;  %v2388_v34 = vld [vmem:[%s3727_s7] ss:$0 sm:$0xff] }
 0x234   : > { %1752 = vrot.lane.b32.xlu1 %v3240_v30, %s2845_s28 }
 0x235   : > { %v1368_v11 = vpop.permute.xlu1 %1367 }
 0x236   : > { %v3245_v48 = vadd.f32 %v2992_v35, %v1368_v11 }
 0x238   : > { %1754 = vrot.lane.b32.xlu1 %v3245_v48, %s2845_s28 }
 0x239   : > { %v1372_v50 = vpop.permute.xlu1 %1371 }
 0x23a   : > { %v3250_v27 = vadd.f32 %v2977_v28, %v1372_v50 }
 0x23c   : > { %1758 = vrot.lane.b32.xlu1 %v3250_v27, %s2845_s28 }
 0x261   : > { %v2522_v49 = vpop.f32.mrb[0].mxu1 }
 0x262   : > { %v1079_v51 = vadd.f32 %v2522_v49, %v2388_v34  ;;  %v1070_v52 = vpop.f32.mrb[1].mxu1 }
 0x263   : > { %v1071_v46 = vadd.f32 %v2388_v34, %v1070_v52  ;;  %v2523_v35 = vpop.f32.mrb[2].mxu1 }
 0x264   : > { %v1082_v53 = vadd.f32 %v2523_v35, %v2388_v34  ;;  %v1073_v54 = vpop.f32.mrb[3].mxu1  ;;  %v1135_v56 = vmax.f32 %v1079_v51, 0.0 }
 0x265   : > { %v1074_v55 = vadd.f32 %v2388_v34, %v1073_v54  ;;  %v1133_v59 = vmax.f32 %v1071_v46, 0.0 }
 0x266   : > { %v1136_v58 = vmax.f32 %v1082_v53, 0.0 }
 0x267   : > { %v1134_v28 = vmax.f32 %v1074_v55, 0.0 }
 0x268   : > { %v1150_v57 = vpack.c.bf16 %v1136_v58, %v1135_v56  ;;  %v3260_v58 = vld [vmem:[%s3729_s9] ss:$0 sm:$0xff] }
 0x269   : > { %v1149_v14 = vpack.c.bf16 %v1134_v28, %v1133_v59 }
 0x26b   : > { %2552 = vmatprep.mubr.bf16.mxu0 %v1149_v14 }
 0x26c   : > { %2553 = vmatmul.mubr.bf16.vlgmr.msra.gmra.mrb[16].mxu0 %v1150_v57 }
 0x270   : > { %v2526_v62 = vpop.f32.mrb[4].mxu1 }
 0x271   : > { %v1095_v63 = vadd.f32 %v2526_v62, %v2388_v34  ;;  %v1086_v61 = vpop.f32.mrb[5].mxu1 }
 0x272   : > { %v1087_v0 = vadd.f32 %v2388_v34, %v1086_v61  ;;  %v2527_v1 = vpop.f32.mrb[6].mxu1 }
 0x273   : > { %v1098_v2 = vadd.f32 %v2527_v1, %v2388_v34  ;;  %v1089_v7 = vpop.f32.mrb[7].mxu1  ;;  %v1139_v9 = vmax.f32 %v1095_v63, 0.0 }
 0x274   : > { %v1090_v8 = vadd.f32 %v2388_v34, %v1089_v7  ;;  %v1137_v60 = vmax.f32 %v1087_v0, 0.0 }
 0x275   : > { %v1140_v12 = vmax.f32 %v1098_v2, 0.0 }
 0x276   : > { %v1138_v13 = vmax.f32 %v1090_v8, 0.0 }
 0x277   : > { %v1152_v17 = vpack.c.bf16 %v1140_v12, %v1139_v9 }
 0x278   : > { %v1151_v18 = vpack.c.bf16 %v1138_v13, %v1137_v60 }
 0x27a   : > { %2556 = vmatprep.mubr.bf16.mxu0 %v1151_v18 }
 0x27b   : > { %2557 = vmatmul.mubr.bf16.gmra.mrb[20].mxu0 %v1152_v17 }
 0x283   : > { %v2530_v22 = vpop.f32.mrb[8].mxu1 }
 0x284   : > { %v1111_v23 = vadd.f32 %v2530_v22, %v2388_v34  ;;  %v1102_v19 = vpop.f32.mrb[9].mxu1 }
 0x285   : > { %v1103_v24 = vadd.f32 %v2388_v34, %v1102_v19  ;;  %v2531_v26 = vpop.f32.mrb[10].mxu1 }
 0x286   : > { %v1114_v32 = vadd.f32 %v2531_v26, %v2388_v34  ;;  %v1105_v33 = vpop.f32.mrb[11].mxu1  ;;  %v1143_v6 = vmax.f32 %v1111_v23, 0.0 }
 0x287   : > { %v1106_v37 = vadd.f32 %v2388_v34, %v1105_v33  ;;  %v1141_v40 = vmax.f32 %v1103_v24, 0.0 }
 0x288   : > { %v1144_v39 = vmax.f32 %v1114_v32, 0.0 }
 0x289   : > { %v1142_v15 = vmax.f32 %v1106_v37, 0.0 }
 0x28a   : > { %v1154_v42 = vpack.c.bf16 %v1144_v39, %v1143_v6 }
 0x28b   : > { %v1153_v20 = vpack.c.bf16 %v1142_v15, %v1141_v40 }
 0x28d   : > { %2560 = vmatprep.mubr.bf16.mxu0 %v1153_v20 }
 0x28e   : > { %2561 = vmatmul.mubr.bf16.gmra.mrb[24].mxu0 %v1154_v42 }
 0x296   : > { %v2534_v44 = vpop.f32.mrb[12].mxu1 }
 0x297   : > { %v1127_v10 = vadd.f32 %v2534_v44, %v2388_v34  ;;  %v1118_v47 = vpop.f32.mrb[13].mxu1 }
 0x298   : > { %v1119_v11 = vadd.f32 %v2388_v34, %v1118_v47  ;;  %v2535_v50 = vpop.f32.mrb[14].mxu1 }
 0x299   : > { %v1130_v49 = vadd.f32 %v2535_v50, %v2388_v34  ;;  %v1121_v51 = vpop.f32.mrb[15].mxu1  ;;  %v1147_v46 = vmax.f32 %v1127_v10, 0.0 }
 0x29a   : > { %v1122_v52 = vadd.f32 %v2388_v34, %v1121_v51  ;;  %v1145_v53 = vmax.f32 %v1119_v11, 0.0 }
 0x29b   : > { %v1148_v35 = vmax.f32 %v1130_v49, 0.0 }
 0x29c   : > { %v1146_v54 = vmax.f32 %v1122_v52, 0.0 }
 0x29d   : > { %v1156_v55 = vpack.c.bf16 %v1148_v35, %v1147_v46 }
 0x29e   : > { %v1155_v56 = vpack.c.bf16 %v1146_v54, %v1145_v53 }
 0x2a0   : > { %2564 = vmatprep.mubr.bf16.mxu1 %v1155_v56 }
 0x2a1   : > { %2565 = vmatmul.mubr.bf16.vlgmr.msra.gmra.mrb[16].mxu1 %v1156_v55 }
 0x33f   : > { %v2554_v59 = vpop.f32.mrb[16].mxu0 }
 0x340   : > { %v1271_v28 = vadd.f32 %v2554_v59, %v3260_v58  ;;  %v1262_v57 = vpop.f32.mrb[17].mxu0 }
 0x341   : > { %v1263_v34 = vadd.f32 %v3260_v58, %v1262_v57  ;;  %v2555_v14 = vpop.f32.mrb[18].mxu0 }
 0x342   : > { %v1420_v62 = vsel %vm1405_vm1, %v1271_v28, -inf  ;;  %v1274_v63 = vadd.f32 %v2555_v14, %v3260_v58  ;;  %v1265_v61 = vpop.f32.mrb[19].mxu0 }
 0x343   : > { %v1421_v0 = vrot.slane %v1420_v62, 4  ;;  %v1406_v1 = vsel %vm1405_vm1, %v1263_v34, -inf  ;;  %v1266_v2 = vadd.f32 %v3260_v58, %v1265_v61 }
 0x344   : > { %v1407_v7 = vrot.slane %v1406_v1, 4  ;;  %v1427_v8 = vsel %vm1405_vm1, %v1274_v63, -inf }
 0x345   : > { %v1422_v9 = vmax.f32 %v1420_v62, %v1421_v0  ;;  %v1428_v12 = vrot.slane %v1427_v8, 4  ;;  %v1413_v60 = vsel %vm1405_vm1, %v1266_v2, -inf }
 0x346   : > { %v1408_v13 = vmax.f32 %v1406_v1, %v1407_v7  ;;  %v1414_v17 = vrot.slane %v1413_v60, 4 }
 0x347   : > { %v1423_v18 = vrot.slane %v1422_v9, 2  ;;  %v1429_v22 = vmax.f32 %v1427_v8, %v1428_v12 }
 0x348   : > { %v1409_v23 = vrot.slane %v1408_v13, 2  ;;  %v1415_v19 = vmax.f32 %v1413_v60, %v1414_v17 }
 0x349   : > { %v1424_v24 = vmax.f32 %v1422_v9, %v1423_v18  ;;  %v1430_v26 = vrot.slane %v1429_v22, 2 }
 0x34a   : > { %v1410_v32 = vmax.f32 %v1408_v13, %v1409_v23  ;;  %v1416_v33 = vrot.slane %v1415_v19, 2 }
 0x34b   : > { %v1425_v37 = vrot.slane %v1424_v24, 1  ;;  %v1431_v6 = vmax.f32 %v1429_v22, %v1430_v26 }
 0x34c   : > { %v1411_v39 = vrot.slane %v1410_v32, 1  ;;  %v1417_v40 = vmax.f32 %v1415_v19, %v1416_v33 }
 0x34d   : > { %v1426_v15 = vmax.f32 %v1424_v24, %v1425_v37  ;;  %v1432_v42 = vrot.slane %v1431_v6, 1 }
 0x34e   : > { %v1412_v20 = vmax.f32 %v1410_v32, %v1411_v39  ;;  %v1418_v44 = vrot.slane %v1417_v40, 1  ;;  %v2558_v10 = vpop.f32.mrb[20].mxu0 }
 0x34f   : > { %v1520_v47 = vsub.f32 %v1271_v28, %v1426_v15  ;;  %v1433_v11 = vmax.f32 %v1431_v6, %v1432_v42  ;;  %v1287_v50 = vadd.f32 %v2558_v10, %v3260_v58  ;;  %v1278_v49 = vpop.f32.mrb[21].mxu0 }
 0x350   : > { %v1518_v51 = vsub.f32 %v1263_v34, %v1412_v20  ;;  %v1419_v52 = vmax.f32 %v1417_v40, %v1418_v44  ;;  %v1279_v46 = vadd.f32 %v3260_v58, %v1278_v49  ;;  %v2559_v35 = vpop.f32.mrb[22].mxu0 }
 0x351   : > { %v1538_v53 = vmul.f32 1.442695, %v1520_v47  ;;  %v1521_v54 = vsub.f32 %v1274_v63, %v1433_v11  ;;  %v1448_v55 = vsel %vm1405_vm1, %v1287_v50, -inf  ;;  %v1290_v56 = vadd.f32 %v2559_v35, %v3260_v58  ;;  %v1281_v59 = vpop.f32.mrb[23].mxu0 }
 0x352   : > { %v1534_v57 = vmul.f32 1.442695, %v1518_v51  ;;  %v1519_v14 = vsub.f32 %v1266_v2, %v1419_v52  ;;  %v1449_v62 = vrot.slane %v1448_v55, 4  ;;  %v1434_v28 = vsel %vm1405_vm1, %v1279_v46, -inf }
 0x353   : > { %2767 = vpow2.f32 %v1538_v53  ;;  %v1540_v61 = vmul.f32 1.442695, %v1521_v54  ;;  %v1435_v0 = vrot.slane %v1434_v28, 4  ;;  %v1455_v34 = vsel %vm1405_vm1, %v1290_v56, -inf }
 0x354   : > { %2769 = vpow2.f32 %v1534_v57  ;;  %v1536_v1 = vmul.f32 1.442695, %v1519_v14  ;;  %v1450_v7 = vmax.f32 %v1448_v55, %v1449_v62  ;;  %v1456_v8 = vrot.slane %v1455_v34, 4 }
 0x355   : > { %2771 = vpow2.f32 %v1540_v61  ;;  %v1436_v63 = vmax.f32 %v1434_v28, %v1435_v0  ;;  %v3277_v9 = vadd.f32 %v3260_v58, %v1281_v59 }
 0x356   : > { %2773 = vpow2.f32 %v1536_v1  ;;  %v1451_v12 = vrot.slane %v1450_v7, 2  ;;  %v1457_v2 = vmax.f32 %v1455_v34, %v1456_v8 }
 0x357   : > { %v1437_v60 = vrot.slane %v1436_v63, 2  ;;  %v1441_v13 = vsel %vm1405_vm1, %v3277_v9, -inf }
 0x358   : > { %v1452_v17 = vmax.f32 %v1450_v7, %v1451_v12  ;;  %v1458_v18 = vrot.slane %v1457_v2, 2  ;;  %v1442_v22 = vrot.slane %v1441_v13, 4 }
 0x359   : > { %v1438_v23 = vmax.f32 %v1436_v63, %v1437_v60 }
 0x35a   : > { %v1453_v19 = vrot.slane %v1452_v17, 1  ;;  %v1459_v24 = vmax.f32 %v1457_v2, %v1458_v18  ;;  %v1443_v26 = vmax.f32 %v1441_v13, %v1442_v22 }
 0x35b   : > { %v1439_v32 = vrot.slane %v1438_v23, 1 }
 0x35c   : > { %v1454_v33 = vmax.f32 %v1452_v17, %v1453_v19  ;;  %v1460_v37 = vrot.slane %v1459_v24, 1  ;;  %v1444_v6 = vrot.slane %v1443_v26, 2 }
 0x35d   : > { %v3281_v39 = vpop.eup %2767  ;;  %v1440_v40 = vmax.f32 %v1438_v23, %v1439_v32 }
 0x35e   : > { %v3283_v15 = vpop.eup %2769  ;;  %v1580_v42 = vsel %vm1405_vm1, %v3281_v39, 0.0  ;;  %v1524_v20 = vsub.f32 %v1287_v50, %v1454_v33  ;;  %v1461_v44 = vmax.f32 %v1459_v24, %v1460_v37  ;;  %v1445_v51 = vmax.f32 %v1443_v26, %v1444_v6 }
 0x35f   : > { %v3287_v10 = vpop.eup %2771  ;;  %v1581_v47 = vrot.slane %v1580_v42, 4  ;;  %v1566_v11 = vsel %vm1405_vm1, %v3283_v15, 0.0  ;;  %v1522_v49 = vsub.f32 %v1279_v46, %v1440_v40 }
 0x360   : > { %v3291_v52 = vpop.eup %2773  ;;  %v1567_v35 = vrot.slane %v1566_v11, 4  ;;  %v1587_v53 = vsel %vm1405_vm1, %v3287_v10, 0.0  ;;  %v1546_v54 = vmul.f32 1.442695, %v1524_v20  ;;  %v1525_v55 = vsub.f32 %v1290_v56, %v1461_v44 }
 0x361   : > { %v1582_v59 = vadd.f32 %v1581_v47, %v1580_v42  ;;  %v1588_v57 = vrot.slane %v1587_v53, 4  ;;  %v1573_v50 = vsel %vm1405_vm1, %v3291_v52, 0.0  ;;  %v1542_v14 = vmul.f32 1.442695, %v1522_v49  ;;  %v2562_v62 = vpop.f32.mrb[24].mxu0 }
 0x362   : > { %v1568_v28 = vadd.f32 %v1567_v35, %v1566_v11  ;;  %v1574_v61 = vrot.slane %v1573_v50, 4  ;;  %2775 = vpow2.f32 %v1546_v54  ;;  %v1548_v46 = vmul.f32 1.442695, %v1525_v55  ;;  %v1294_v0 = vpop.f32.mrb[25].mxu0 }
 0x363   : > { %v1583_v34 = vrot.slane %v1582_v59, 2  ;;  %v1589_v1 = vadd.f32 %v1588_v57, %v1587_v53  ;;  %2777 = vpow2.f32 %v1542_v14  ;;  %v1446_v7 = vrot.slane %v1445_v51, 1  ;;  %v2563_v8 = vpop.f32.mrb[26].mxu0 }
 0x364   : > { %v1569_v63 = vrot.slane %v1568_v28, 2  ;;  %v1575_v12 = vadd.f32 %v1574_v61, %v1573_v50  ;;  %2779 = vpow2.f32 %v1548_v46  ;;  %v3298_v56 = vadd.f32 %v2562_v62, %v3260_v58  ;;  %v1297_v2 = vpop.f32.mrb[27].mxu0 }
 0x365   : > { %v1584_v60 = vadd.f32 %v1583_v34, %v1582_v59  ;;  %v1590_v13 = vrot.slane %v1589_v1, 2  ;;  %v1447_v17 = vmax.f32 %v1445_v51, %v1446_v7  ;;  %v3301_v18 = vadd.f32 %v3260_v58, %v1294_v0 }
 0x366   : > { %v1570_v22 = vadd.f32 %v1569_v63, %v1568_v28  ;;  %v1576_v23 = vrot.slane %v1575_v12, 2  ;;  %v1476_v19 = vsel %vm1405_vm1, %v3298_v56, -inf  ;;  %v3306_v24 = vadd.f32 %v2563_v8, %v3260_v58 }
 0x367   : > { %v1585_v26 = vrot.slane %v1584_v60, 1  ;;  %v1591_v32 = vadd.f32 %v1590_v13, %v1589_v1  ;;  %v1477_v33 = vrot.slane %v1476_v19, 4  ;;  %v1462_v40 = vsel %vm1405_vm1, %v3301_v18, -inf  ;;  %v2765_v13 = vld [vmem:[%s3730_s10] sm:$0xff]  }
 0x368   : > { %v1571_v37 = vrot.slane %v1570_v22, 1  ;;  %v1577_v6 = vadd.f32 %v1576_v23, %v1575_v12  ;;  %v1483_v42 = vsel %vm1405_vm1, %v3306_v24, -inf  ;;  %v1523_v47 = vsub.f32 %v3277_v9, %v1447_v17  ;;  %v1733_v9 = vpop.permute.xlu0 %1732 }
 0x369   : > { %v1586_v20 = vadd.f32 %v1585_v26, %v1584_v60  ;;  %v1592_v44 = vrot.slane %v1591_v32, 1  ;;  %v1478_v11 = vmax.f32 %v1476_v19, %v1477_v33  ;;  %v1463_v35 = vrot.slane %v1462_v40, 4 }
 0x36a   : > { %v1572_v49 = vadd.f32 %v1571_v37, %v1570_v22  ;;  %v1578_v51 = vrot.slane %v1577_v6, 1  ;;  %v1484_v53 = vrot.slane %v1483_v42, 4  ;;  %v3314_v59 = vadd.f32 %v3260_v58, %v1297_v2 }
 0x36b   : > { %2781 = vrcp.f32 %v1586_v20  ;;  %v1593_v54 = vadd.f32 %v1592_v44, %v1591_v32  ;;  %v1479_v55 = vrot.slane %v1478_v11, 2  ;;  %v1464_v14 = vmax.f32 %v1462_v40, %v1463_v35 }
 0x36c   : > { %v3316_v57 = vpop.eup %2775  ;;  %2783 = vrcp.f32 %v1572_v49  ;;  %v1579_v50 = vadd.f32 %v1578_v51, %v1577_v6  ;;  %v1485_v62 = vmax.f32 %v1483_v42, %v1484_v53  ;;  %v1469_v0 = vsel %vm1405_vm1, %v3314_v59, -inf  ;;  %v1729_v44 = vpop.permute.xlu0 %1728  ;;  %v2766_v51 = vld [vmem:[%s3730_s10 + $0x8] sm:$0xff]  }
 0x36d   : > { %v3318_v28 = vpop.eup %2777  ;;  %2785 = vrcp.f32 %v1593_v54  ;;  %v1608_v61 = vsel %vm1405_vm1, %v3316_v57, 0.0  ;;  %v1480_v46 = vmax.f32 %v1478_v11, %v1479_v55  ;;  %v1465_v8 = vrot.slane %v1464_v14, 2 }
 0x36e   : > { %v3324_v34 = vpop.eup %2779  ;;  %2787 = vrcp.f32 %v1579_v50  ;;  %v1609_v1 = vrot.slane %v1608_v61, 4  ;;  %v1594_v7 = vsel %vm1405_vm1, %v3318_v28, 0.0  ;;  %v1544_v2 = vmul.f32 1.442695, %v1523_v47 }
 0x36f   : > { %v1595_v63 = vrot.slane %v1594_v7, 4  ;;  %v1615_v12 = vsel %vm1405_vm1, %v3324_v34, 0.0  ;;  %v1481_v60 = vrot.slane %v1480_v46, 1  ;;  %v1466_v23 = vmax.f32 %v1464_v14, %v1465_v8 }
 0x370   : > { %v1610_v17 = vadd.f32 %v1609_v1, %v1608_v61  ;;  %v1616_v22 = vrot.slane %v1615_v12, 4  ;;  %v1486_v19 = vrot.slane %v1485_v62, 2  ;;  %v1470_v33 = vrot.slane %v1469_v0, 4 }
 0x371   : > { %v1596_v26 = vadd.f32 %v1595_v63, %v1594_v7  ;;  %v1482_v32 = vmax.f32 %v1480_v46, %v1481_v60  ;;  %v1467_v40 = vrot.slane %v1466_v23, 1  ;;  %v2846_v20 = vmov 0.0  }
 0x372   : > { %v1611_v37 = vrot.slane %v1610_v17, 2  ;;  %v1617_v6 = vadd.f32 %v1616_v22, %v1615_v12  ;;  %v3333_v42 = vmax.f32 %v1485_v62, %v1486_v19  ;;  %2568 = vmatprep.subr.bf16.mxu1 %v2846_v20  ;;  %v3337_v49 = vmax.f32 %v1469_v0, %v1470_v33  ;;  %2572 = vmatprep.mubr.msk.bf16.mxu1 %vm2847_vm2, %v2846_v20 }
 0x373   : > { %v1597_v47 = vrot.slane %v1596_v26, 2  ;;  %v1528_v11 = vsub.f32 %v3298_v56, %v1482_v32  ;;  %2569 = vmatpush3.bf16.msra.mxu1 %v2765_v13  ;;  %2789 = vpow2.f32 %v1544_v2  ;;  %v3348_v46 = vmax.f32 %v1466_v23, %v1467_v40 }
 0x374   : > { %v1612_v35 = vadd.f32 %v1611_v37, %v1610_v17  ;;  %v1618_v53 = vrot.slane %v1617_v6, 2  ;;  %v2566_v54 = vpop.f32.mrb[16].mxu1  ;;  %2570 = vmatprep.subr.bf16.mxu1 %v2846_v20  ;;  %v1488_v0 = vrot.slane %v3333_v42, 1  ;;  %v1472_v1 = vrot.slane %v3337_v49, 2 }
 0x375   : > { %v2782_v55 = vpop.eup %2781  ;;  %v1598_v50 = vadd.f32 %v1597_v47, %v1596_v26  ;;  %v1554_v56 = vmul.f32 1.442695, %v1528_v11  ;;  %v3345_v14 = vpop.f32.mrb[17].mxu1  ;;  %v3358_v2 = vadd.f32 %v2566_v54, %v3260_v58 }
 0x376   : > { %v2784_v62 = vpop.eup %2783  ;;  %v1696_v61 = vmul.f32 %v2782_v55, %v3281_v39  ;;  %v3352_v7 = vpop.f32.mrb[18].mxu1  ;;  %v1613_v12 = vrot.slane %v1612_v35, 1  ;;  %v3355_v60 = vadd.f32 %v1618_v53, %v1617_v6 }
 0x377   : > { %v2786_v8 = vpop.eup %2785  ;;  %v1694_v63 = vmul.f32 %v2784_v62, %v3283_v15  ;;  %v3360_v13 = vpop.f32.mrb[19].mxu1  ;;  %2571 = vmatpush3.bf16.msra.mxu1 %v2766_v51  ;;  %v1599_v19 = vrot.slane %v1598_v50, 1  ;;  %2791 = vpow2.f32 %v1554_v56 }
 0x378   : > { %v2788_v39 = vpop.eup %2787  ;;  %v1778_v17 = vmul.f32 %v1733_v9, %v1696_v61  ;;  %v2045_v22 = vmul.f32 %v1696_v61, %v3175_v25  ;;  %v1697_v23 = vmul.f32 %v2786_v8, %v3287_v10  ;;  %2576 = vmatprep.subr.bf16.mxu1 %v2846_v20  ;;  %v1735_v26 = vpop.permute.xlu0 %1734  ;;  %v1614_v62 = vadd.f32 %v1613_v12, %v1612_v35 }
 0x379   : > { %v1776_v15 = vmul.f32 %v1729_v44, %v1694_v63  ;;  %v2043_v32 = vmul.f32 %v1694_v63, %v3180_v31  ;;  %v1695_v33 = vmul.f32 %v2788_v39, %v3291_v52  ;;  %v1731_v53 = vpop.permute.xlu1 %1730 }
 0x37a   : > { %v1806_v37 = vsel %vm843_vm0, %v1778_v17, 0.0  ;;  %v2074_v6 = vsel %vm2059_vm3, %v2045_v22, 0.0  ;;  %v1779_v40 = vmul.f32 %v1735_v26, %v1697_v23  ;;  %v2046_v9 = vmul.f32 %v1697_v23, %v3190_v3 }
 0x37b   : > { %v1807_v25 = vrot.slane %v1806_v37, 4  ;;  %v2075_v47 = vrot.slane %v2074_v6, 4  ;;  %v1792_v10 = vsel %vm843_vm0, %v1776_v15, 0.0  ;;  %v2060_v11 = vsel %vm2059_vm3, %v2043_v32, 0.0 }
 0x37c   : > { %v1793_v51 = vrot.slane %v1792_v10, 4  ;;  %v2061_v44 = vrot.slane %v2060_v11, 4  ;;  %v1813_v31 = vsel %vm843_vm0, %v1779_v40, 0.0  ;;  %v2081_v52 = vsel %vm2059_vm3, %v2046_v9, 0.0  ;;  %v3377_v17 = vpop.permute.xlu0 %1736 }
 0x37d   : > { %v1808_v54 = vadd.f32 %v1807_v25, %v1806_v37  ;;  %v2076_v55 = vadd.f32 %v2075_v47, %v2074_v6  ;;  %v1814_v56 = vrot.slane %v1813_v31, 4  ;;  %v1777_v3 = vmul.f32 %v1731_v53, %v1695_v33  ;;  %v3375_v39 = vpop.eup %2789 }
 0x37e   : > { %v1794_v61 = vadd.f32 %v1793_v51, %v1792_v10  ;;  %v2062_v8 = vadd.f32 %v2061_v44, %v2060_v11  ;;  %v2044_v63 = vmul.f32 %v1695_v33, %v3183_v36  ;;  %v2082_v15 = vrot.slane %v2081_v52, 4 }
 0x37f   : > { %v1809_v22 = vrot.slane %v1808_v54, 2  ;;  %v2077_v23 = vrot.slane %v2076_v55, 2  ;;  %v1815_v26 = vadd.f32 %v1814_v56, %v1813_v31  ;;  %v1799_v37 = vsel %vm843_vm0, %v1777_v3, 0.0 }
 0x380   : > { %v1795_v32 = vrot.slane %v1794_v61, 2  ;;  %v2063_v40 = vrot.slane %v2062_v8, 2  ;;  %v2067_v6 = vsel %vm2059_vm3, %v2044_v63, 0.0  ;;  %v1600_v9 = vadd.f32 %v1599_v19, %v1598_v50  ;;  %v3389_v50 = vpop.permute.xlu0 %1738 }
 0x381   : > { %v1810_v35 = vadd.f32 %v1809_v22, %v1808_v54  ;;  %v1816_v12 = vrot.slane %v1815_v26, 2  ;;  %v1526_v36 = vsub.f32 %v3301_v18, %v3348_v46  ;;  %v1800_v47 = vrot.slane %v1799_v37, 4  ;;  %v3383_v11 = vpop.eup %2791 }
 0x382   : > { %v1796_v33 = vadd.f32 %v1795_v32, %v1794_v61  ;;  %v2064_v25 = vadd.f32 %v2063_v40, %v2062_v8  ;;  %v2068_v10 = vrot.slane %v2067_v6, 4  ;;  %v3385_v31 = vadd.f32 %v2082_v15, %v2081_v52 }
 0x383   : > { %v1811_v51 = vrot.slane %v1810_v35, 1  ;;  %v1817_v44 = vadd.f32 %v1816_v12, %v1815_v26  ;;  %2793 = vrcp.f32 %v1614_v62  ;;  %v3387_v53 = vadd.f32 %v2077_v23, %v2076_v55 }
 0x384   : > { %v1797_v56 = vrot.slane %v1796_v33, 1  ;;  %v1801_v54 = vadd.f32 %v1800_v47, %v1799_v37  ;;  %v2069_v3 = vadd.f32 %v2068_v10, %v2067_v6  ;;  %2795 = vrcp.f32 %v1600_v9  ;;  %v3398_v37 = vpop.permute.xlu0 %1744 }
 0x385   : > { %v1812_v19 = vadd.f32 %v1811_v51, %v1810_v35  ;;  %v1818_v18 = vrot.slane %v1817_v44, 1  ;;  %v1620_v46 = vrot.slane %v3355_v60, 1  ;;  %v2065_v8 = vrot.slane %v2064_v25, 1 }
 0x386   : > { %v1798_v61 = vadd.f32 %v1797_v56, %v1796_v33  ;;  %v1802_v63 = vrot.slane %v1801_v54, 2  ;;  %v2070_v22 = vrot.slane %v2069_v3, 2  ;;  %v1601_v55 = vsel %vm1405_vm1, %v3375_v39, 0.0 }
 0x387   : > { %v1906_v26 = vpack.c.bf16 %v1812_v19, %v1812_v19  ;;  %v1621_v52 = vadd.f32 %v1620_v46, %v3355_v60  ;;  %v1489_v62 = vmax.f32 %v3333_v42, %v1488_v0  ;;  %v1819_v15 = vadd.f32 %v1818_v18, %v1817_v44 }
 0x388   : > { %v1904_v23 = vpack.c.bf16 %v1798_v61, %v1798_v61  ;;  %v1803_v32 = vadd.f32 %v1802_v63, %v1801_v54  ;;  %v1602_v40 = vrot.slane %v1601_v55, 4  ;;  %v2079_v6 = vrot.slane %v3387_v53, 1 }
 0x389   : > { %v2084_v35 = vrot.slane %v3385_v31, 2  ;;  %2797 = vrcp.f32 %v1621_v52  ;;  %v1636_v60 = vsel %vm1405_vm1, %v3383_v11, 0.0  ;;  %v3404_v12 = vadd.f32 %v2065_v8, %v2064_v25 }
 0x38a   : > { %v1804_v9 = vrot.slane %v1803_v32, 1  ;;  %v2071_v33 = vadd.f32 %v2070_v22, %v2069_v3  ;;  %v1603_v47 = vadd.f32 %v1602_v40, %v1601_v55  ;;  %v3406_v42 = vunpack.c.l.b16 %v1906_v26  ;;  %v1741_v22 = vpop.permute.xlu0 %1740 }
 0x38b   : > { %v1637_v0 = vrot.slane %v1636_v60, 4  ;;  %v1550_v10 = vmul.f32 1.442695, %v1526_v36  ;;  %v1529_v51 = vsub.f32 %v3306_v24, %v1489_v62  ;;  %v3409_v44 = vunpack.c.l.b16 %v1904_v23 }
 0x38c   : > { %v1907_v56 = vpack.c.bf16 %v1819_v15, %v1819_v15  ;;  %v1604_v54 = vrot.slane %v1603_v47, 2  ;;  %v1473_v19 = vmax.f32 %v3337_v49, %v1472_v1  ;;  %v1504_v3 = vsel %vm1405_vm1, %v3358_v2, -inf }
 0x38d   : > { %v2794_v18 = vpop.eup %2793  ;;  %v1638_v25 = vadd.f32 %v1637_v0, %v1636_v60  ;;  %2799 = vpow2.f32 %v1550_v10  ;;  %v1556_v46 = vmul.f32 1.442695, %v1529_v51  ;;  %v1805_v61 = vadd.f32 %v1804_v9, %v1803_v32 }
 0x38e   : > { %v1700_v36 = vmul.f32 %v2794_v18, %v3316_v57  ;;  %v1605_v8 = vadd.f32 %v1604_v54, %v1603_v47  ;;  %v1474_v24 = vrot.slane %v1473_v19, 1  ;;  %v2796_v63 = vpop.eup %2795  ;;  %v2072_v26 = vrot.slane %v2071_v33, 1 }
 0x38f   : > { %v1639_v52 = vrot.slane %v1638_v25, 2  ;;  %2801 = vpow2.f32 %v1556_v46  ;;  %v1505_v55 = vrot.slane %v1504_v3, 4  ;;  %v3417_v62 = vunpack.c.l.b16 %v1907_v56  ;;  %v1743_v46 = vpop.permute.xlu0 %1742 }
 0x390   : > { %v1782_v49 = vmul.f32 %v1741_v22, %v1700_v36  ;;  %v1698_v1 = vmul.f32 %v2796_v63, %v3318_v28  ;;  %v3422_v23 = vadd.f32 %v3260_v58, %v3345_v14  ;;  %v1606_v15 = vrot.slane %v1605_v8, 1 }
 0x391   : > { %v1640_v32 = vadd.f32 %v1639_v52, %v1638_v25  ;;  %v1475_v57 = vmax.f32 %v1473_v19, %v1474_v24  ;;  %v1506_v40 = vmax.f32 %v1504_v3, %v1505_v55  ;;  %v1905_v60 = vpack.c.bf16 %v1805_v61, %v1805_v61 }
 0x392   : > { %v1834_v9 = vsel %vm843_vm0, %v1782_v49, 0.0  ;;  %v1780_v47 = vmul.f32 %v3377_v17, %v1698_v1  ;;  %v2047_v0 = vmul.f32 %v1698_v1, %v3195_v5  ;;  %v1607_v56 = vadd.f32 %v1606_v15, %v1605_v8 }
 0x393   : > { %v2798_v10 = vpop.eup %2797  ;;  %v1835_v51 = vrot.slane %v1834_v9, 4  ;;  %v1641_v54 = vrot.slane %v1640_v32, 1  ;;  %v1527_v28 = vsub.f32 %v3314_v59, %v1475_v57  ;;  %v3428_v18 = vadd.f32 %v2072_v26, %v2071_v33 }
 0x394   : > { %v1820_v14 = vsel %vm843_vm0, %v1780_v47, 0.0  ;;  %v1701_v19 = vmul.f32 %v2798_v10, %v3324_v34  ;;  %v1507_v25 = vrot.slane %v1506_v40, 2  ;;  %v2088_v61 = vsel %vm2059_vm3, %v2047_v0, 0.0 }
 0x395   : > { %v1821_v3 = vrot.slane %v1820_v14, 4  ;;  %2803 = vrcp.f32 %v1607_v56  ;;  %v1490_v5 = vsel %vm1405_vm1, %v3422_v23, -inf  ;;  %v3435_v17 = vunpack.c.l.b16 %v1905_v60 }
 0x396   : > { %v1783_v8 = vmul.f32 %v1743_v46, %v1701_v19  ;;  %v1642_v24 = vadd.f32 %v1641_v54, %v1640_v32  ;;  %v1552_v59 = vmul.f32 1.442695, %v1527_v28  ;;  %v1836_v63 = vadd.f32 %v1835_v51, %v1834_v9 }
 0x397   : > { %v3437_v33 = vpop.eup %2799  ;;  %v3440_v22 = vmul.f32 %v1700_v36, %v3218_v43  ;;  %v1822_v34 = vadd.f32 %v1821_v3, %v1820_v14  ;;  %v1508_v26 = vmax.f32 %v1506_v40, %v1507_v25  ;;  %v2089_v52 = vrot.slane %v2088_v61, 4 }
 0x398   : > { %2805 = vrcp.f32 %v1642_v24  ;;  %v1622_v55 = vsel %vm1405_vm1, %v3437_v33, 0.0  ;;  %v1491_v49 = vrot.slane %v1490_v5, 4  ;;  %v1841_v32 = vsel %vm843_vm0, %v1783_v8, 0.0 }
 0x399   : > { %v3444_v1 = vpop.eup %2801  ;;  %v1823_v15 = vrot.slane %v1822_v34, 2  ;;  %v3448_v57 = vmul.f32 %v1701_v19, %v3228_v45  ;;  %v1623_v60 = vrot.slane %v1622_v55, 4  ;;  %2807 = vpow2.f32 %v1552_v59 }
 0x39a   : > { %v1643_v43 = vsel %vm1405_vm1, %v3444_v1, 0.0  ;;  %v1509_v36 = vrot.slane %v1508_v26, 1  ;;  %v1492_v40 = vmax.f32 %v1490_v5, %v1491_v49  ;;  %v1837_v9 = vrot.slane %v1836_v63, 2 }
 0x39b   : > { %v1824_v47 = vadd.f32 %v1823_v15, %v1822_v34  ;;  %v1624_v0 = vadd.f32 %v1623_v60, %v1622_v55  ;;  %v1644_v10 = vrot.slane %v1643_v43, 4  ;;  %v3454_v54 = vadd.f32 %v3352_v7, %v3260_v58 }
 0x39c   : > { %v1510_v51 = vmax.f32 %v1508_v26, %v1509_v36  ;;  %v1493_v56 = vrot.slane %v1492_v40, 2  ;;  %v3458_v45 = vadd.f32 %v3260_v58, %v3360_v13  ;;  %v3460_v28 = vadd.f32 %v2089_v52, %v2088_v61 }
 0x39d   : > { %v1842_v14 = vrot.slane %v1841_v32, 4  ;;  %v1625_v19 = vrot.slane %v1624_v0, 2  ;;  %v1645_v25 = vadd.f32 %v1644_v10, %v1643_v43  ;;  %v1511_v5 = vsel %vm1405_vm1, %v3454_v54, -inf }
 0x39e   : > { %v1532_v46 = vsub.f32 %v3358_v2, %v1510_v51  ;;  %v1494_v3 = vmax.f32 %v1492_v40, %v1493_v56  ;;  %v1497_v8 = vsel %vm1405_vm1, %v3458_v45, -inf  ;;  %v1825_v24 = vrot.slane %v1824_v47, 1  ;;  %v1749_v51 = vpop.permute.xlu1 %1748 }
 0x39f   : > { %v2804_v7 = vpop.eup %2803  ;;  %v1626_v59 = vadd.f32 %v1625_v19, %v1624_v0  ;;  %v1646_v34 = vrot.slane %v1645_v25, 2  ;;  %v1512_v58 = vrot.slane %v1511_v5, 4  ;;  %v3467_v13 = vadd.f32 %v1837_v9, %v1836_v63 }
 0x3a0   : > { %v1699_v61 = vmul.f32 %v2804_v7, %v3375_v39  ;;  %v1562_v26 = vmul.f32 1.442695, %v1532_v46  ;;  %v1495_v52 = vrot.slane %v1494_v3, 1  ;;  %v1498_v15 = vrot.slane %v1497_v8, 4 }
 0x3a1   : > { %v1627_v55 = vrot.slane %v1626_v59, 1  ;;  %v1647_v2 = vadd.f32 %v1646_v34, %v1645_v25  ;;  %v1513_v49 = vmax.f32 %v1511_v5, %v1512_v58  ;;  %v3470_v43 = vadd.f32 %v1842_v14, %v1841_v32 }
 0x3a2   : > { %v2806_v60 = vpop.eup %2805  ;;  %v1781_v36 = vmul.f32 %v3389_v50, %v1699_v61  ;;  %2809 = vpow2.f32 %v1562_v26  ;;  %v1496_v40 = vmax.f32 %v1494_v3, %v1495_v52  ;;  %v3473_v0 = vadd.f32 %v1825_v24, %v1824_v47 }
 0x3a3   : > { %v1704_v63 = vmul.f32 %v2806_v60, %v3383_v11  ;;  %v1628_v9 = vadd.f32 %v1627_v55, %v1626_v59  ;;  %v1648_v10 = vrot.slane %v1647_v2, 1  ;;  %v3476_v39 = vpop.eup %2807  ;;  %v2048_v19 = vmul.f32 %v1699_v61, %v3200_v38 }
 0x3a4   : > { %v1827_v56 = vsel %vm843_vm0, %v1781_v36, 0.0  ;;  %v1530_v32 = vsub.f32 %v3422_v23, %v1496_v40  ;;  %v1514_v14 = vrot.slane %v1513_v49, 2  ;;  %v1499_v47 = vmax.f32 %v1497_v8, %v1498_v15 }
 0x3a5   : > { %v1828_v25 = vrot.slane %v1827_v56, 4  ;;  %v1786_v50 = vmul.f32 %v1749_v51, %v1704_v63  ;;  %v2053_v46 = vmul.f32 %v1704_v63, %v3205_v4  ;;  %2811 = vrcp.f32 %v1628_v9 }
 0x3a6   : > { %v1649_v3 = vadd.f32 %v1648_v10, %v1647_v2  ;;  %v1629_v11 = vsel %vm1405_vm1, %v3476_v39, 0.0  ;;  %v1558_v5 = vmul.f32 1.442695, %v1530_v32  ;;  %v1515_v58 = vmax.f32 %v1513_v49, %v1514_v14 }
 0x3a7   : > { %v1829_v7 = vadd.f32 %v1828_v25, %v1827_v56  ;;  %v1862_v24 = vsel %vm843_vm0, %v1786_v50, 0.0  ;;  %v2130_v59 = vsel %vm2059_vm3, %v2053_v46, 0.0  ;;  %v1630_v38 = vrot.slane %v1629_v11, 4 }
 0x3a8   : > { %v1863_v34 = vrot.slane %v1862_v24, 4  ;;  %v2131_v23 = vrot.slane %v2130_v59, 4  ;;  %2813 = vrcp.f32 %v1649_v3  ;;  %v1500_v4 = vrot.slane %v1499_v47, 2 }
 0x3a9   : > { %v1830_v61 = vrot.slane %v1829_v7, 2  ;;  %v1631_v26 = vadd.f32 %v1630_v38, %v1629_v11  ;;  %2815 = vpow2.f32 %v1558_v5  ;;  %v1844_v8 = vrot.slane %v3470_v43, 2 }
 0x3aa   : > { %v1864_v52 = vadd.f32 %v1863_v34, %v1862_v24  ;;  %v2132_v55 = vadd.f32 %v2131_v23, %v2130_v59  ;;  %v1516_v2 = vrot.slane %v1515_v58, 1  ;;  %v1908_v15 = vpack.c.bf16 %v3473_v0, %v3473_v0 }
 0x3ab   : > { %v3490_v60 = vsel %vm2059_vm3, %v2048_v19, 0.0  ;;  %v1632_v36 = vrot.slane %v1631_v26, 2  ;;  %v1501_v40 = vmax.f32 %v1499_v47, %v1500_v4  ;;  %v3494_v49 = vadd.f32 %v1830_v61, %v1829_v7 }
 0x3ac   : > { %v3492_v63 = vpop.eup %2809  ;;  %v1865_v9 = vrot.slane %v1864_v52, 2  ;;  %v2133_v10 = vrot.slane %v2132_v55, 2  ;;  %v1517_v51 = vmax.f32 %v1515_v58, %v1516_v2  ;;  %v3501_v25 = vadd.f32 %v2084_v35, %v3385_v31 }
 0x3ad   : > { %v1633_v56 = vadd.f32 %v1632_v36, %v1631_v26  ;;  %v1664_v32 = vsel %vm1405_vm1, %v3492_v63, 0.0  ;;  %v1502_v14 = vrot.slane %v1501_v40, 1  ;;  %v2091_v47 = vrot.slane %v3460_v28, 2 }
 0x3ae   : > { %v1866_v19 = vadd.f32 %v1865_v9, %v1864_v52  ;;  %v1665_v50 = vrot.slane %v1664_v32, 4  ;;  %v1533_v46 = vsub.f32 %v3454_v54, %v1517_v51  ;;  %v2096_v3 = vrot.slane %v3490_v60, 4 }
 0x3af   : > { %v1634_v11 = vrot.slane %v1633_v56, 1  ;;  %v1503_v5 = vmax.f32 %v1501_v40, %v1502_v14  ;;  %v3509_v7 = vadd.f32 %v2079_v6, %v3387_v53  ;;  %v2812_v24 = vpop.eup %2811  ;;  %v1832_v59 = vrot.slane %v3494_v49, 1 }
 0x3b0   : > { %v3512_v31 = vadd.f32 %v2133_v10, %v2132_v55  ;;  %v1666_v35 = vadd.f32 %v1665_v50, %v1664_v32  ;;  %v1564_v38 = vmul.f32 1.442695, %v1533_v46  ;;  %v1702_v54 = vmul.f32 %v2812_v24, %v3437_v33  ;;  %v1751_v33 = vpop.permute.xlu1 %1750 }
 0x3b1   : > { %v1635_v34 = vadd.f32 %v1634_v11, %v1633_v56  ;;  %v1531_v23 = vsub.f32 %v3458_v45, %v1503_v5  ;;  %v2086_v58 = vrot.slane %v3501_v25, 1  ;;  %v1867_v26 = vrot.slane %v1866_v19, 1 }
 0x3b2   : > { %v2814_v61 = vpop.eup %2813  ;;  %v1667_v4 = vrot.slane %v1666_v35, 2  ;;  %2817 = vpow2.f32 %v1564_v38  ;;  %v2092_v53 = vadd.f32 %v2091_v47, %v3460_v28  ;;  %v1784_v52 = vmul.f32 %v3398_v37, %v1702_v54 }
 0x3b3   : > { %v3518_v6 = vpop.eup %2815  ;;  %v2051_v55 = vmul.f32 %v1702_v54, %v3208_v41  ;;  %v1705_v2 = vmul.f32 %v2814_v61, %v3444_v1  ;;  %2819 = vrcp.f32 %v1635_v34  ;;  %v2135_v45 = vrot.slane %v3512_v31, 1 }
 0x3b4   : > { %v1668_v36 = vadd.f32 %v1667_v4, %v1666_v35  ;;  %v1650_v40 = vsel %vm1405_vm1, %v3518_v6, 0.0  ;;  %v1560_v9 = vmul.f32 1.442695, %v1531_v23  ;;  %v1848_v10 = vsel %vm843_vm0, %v1784_v52, 0.0 }
 0x3b5   : > { %v2116_v28 = vsel %vm2059_vm3, %v2051_v55, 0.0  ;;  %v1787_v51 = vmul.f32 %v1751_v33, %v1705_v2  ;;  %v2054_v37 = vmul.f32 %v1705_v2, %v3215_v16  ;;  %v1868_v56 = vadd.f32 %v1867_v26, %v1866_v19 }
 0x3b6   : > { %v1849_v41 = vrot.slane %v1848_v10, 4  ;;  %v2117_v32 = vrot.slane %v2116_v28, 4  ;;  %v1669_v1 = vrot.slane %v1668_v36, 1  ;;  %v1651_v46 = vrot.slane %v1650_v40, 4 }
 0x3b7   : > { %v1869_v14 = vsel %vm843_vm0, %v1787_v51, 0.0  ;;  %v2137_v50 = vsel %vm2059_vm3, %v2054_v37, 0.0  ;;  %2821 = vpow2.f32 %v1560_v9  ;;  %v2093_v54 = vrot.slane %v2092_v53, 1 }
 0x3b8   : > { %v1850_v47 = vadd.f32 %v1849_v41, %v1848_v10  ;;  %v2118_v11 = vadd.f32 %v2117_v32, %v2116_v28  ;;  %v1870_v5 = vrot.slane %v1869_v14, 4  ;;  %v2138_v24 = vrot.slane %v2137_v50, 4  ;;  %v1747_v41 = vpop.permute.xlu1 %1746 }
 0x3b9   : > { %v1670_v35 = vadd.f32 %v1669_v1, %v1668_v36  ;;  %v1652_v38 = vadd.f32 %v1651_v46, %v1650_v40  ;;  %v2097_v34 = vadd.f32 %v2096_v3, %v3490_v60  ;;  %v1914_v16 = vpack.c.bf16 %v1868_v56, %v1868_v56 }
 0x3ba   : > { %v1851_v19 = vrot.slane %v1850_v47, 2  ;;  %v2119_v23 = vrot.slane %v2118_v11, 2  ;;  %v1871_v61 = vadd.f32 %v1870_v5, %v1869_v14  ;;  %v2102_v52 = vsel %vm2059_vm3, %v3440_v22, 0.0 }
 0x3bb   : > { %2823 = vrcp.f32 %v1670_v35  ;;  %v1653_v26 = vrot.slane %v1652_v38, 2  ;;  %v2098_v4 = vrot.slane %v2097_v34, 2  ;;  %v3536_v36 = vadd.f32 %v2138_v24, %v2137_v50 }
 0x3bc   : > { %v3534_v55 = vpop.eup %2817  ;;  %v1852_v2 = vadd.f32 %v1851_v19, %v1850_v47  ;;  %v2120_v33 = vadd.f32 %v2119_v23, %v2118_v11  ;;  %v1872_v9 = vrot.slane %v1871_v61, 2  ;;  %v2103_v28 = vrot.slane %v2102_v52, 4 }
 0x3bd   : > { %v2820_v40 = vpop.eup %2819  ;;  %v1654_v10 = vadd.f32 %v1653_v26, %v1652_v38  ;;  %v1671_v60 = vsel %vm1405_vm1, %v3534_v55, 0.0  ;;  %v2099_v3 = vadd.f32 %v2098_v4, %v2097_v34  ;;  %v3542_v22 = vadd.f32 %v2086_v58, %v3501_v25 }
 0x3be   : > { %v1853_v51 = vrot.slane %v1852_v2, 1  ;;  %v2121_v37 = vrot.slane %v2120_v33, 1  ;;  %v1703_v56 = vmul.f32 %v2820_v40, %v3476_v39  ;;  %v3544_v32 = vunpack.c.l.b16 %v1914_v16 }
 0x3bf   : > { %v1655_v1 = vrot.slane %v1654_v10, 1  ;;  %v1672_v14 = vrot.slane %v1671_v60, 4  ;;  %v3546_v50 = vadd.f32 %v2093_v54, %v2092_v53  ;;  %v1873_v46 = vadd.f32 %v1872_v9, %v1871_v61 }
 0x3c0   : > { %v2140_v47 = vrot.slane %v3536_v36, 2  ;;  %v1785_v11 = vmul.f32 %v1747_v41, %v1703_v56  ;;  %v2100_v5 = vrot.slane %v2099_v3, 1  ;;  %v2052_v35 = vmul.f32 %v1703_v56, %v3225_v29 }
 0x3c1   : > { %v3549_v24 = vpop.eup %2821  ;;  %v1656_v39 = vadd.f32 %v1655_v1, %v1654_v10  ;;  %v1673_v38 = vadd.f32 %v1672_v14, %v1671_v60  ;;  %v2104_v25 = vadd.f32 %v2103_v28, %v2102_v52  ;;  %v1854_v58 = vadd.f32 %v1853_v51, %v1852_v2  ;;  %v1757_v52 = vpop.permute.xlu1 %1756 }
 0x3c2   : > { %v3552_v34 = vadd.f32 %v2121_v37, %v2120_v33  ;;  %v1855_v16 = vsel %vm843_vm0, %v1785_v11, 0.0  ;;  %v1657_v53 = vsel %vm1405_vm1, %v3549_v24, 0.0  ;;  %v2123_v19 = vsel %vm2059_vm3, %v2052_v35, 0.0 }
 0x3c3   : > { %v1856_v54 = vrot.slane %v1855_v16, 4  ;;  %2825 = vrcp.f32 %v1656_v39  ;;  %v1674_v23 = vrot.slane %v1673_v38, 2  ;;  %v1874_v61 = vrot.slane %v1873_v46, 1 }
 0x3c4   : > { %v2124_v26 = vrot.slane %v2123_v19, 4  ;;  %v1658_v4 = vrot.slane %v1657_v53, 4  ;;  %v3558_v29 = vadd.f32 %v2100_v5, %v2099_v3  ;;  %v2105_v40 = vrot.slane %v2104_v25, 2 }
 0x3c5   : > { %v2824_v9 = vpop.eup %2823  ;;  %v1857_v2 = vadd.f32 %v1856_v54, %v1855_v16  ;;  %v1675_v33 = vadd.f32 %v1674_v23, %v1673_v38  ;;  %v2109_v10 = vsel %vm2059_vm3, %v3448_v57, 0.0  ;;  %v1912_v60 = vpack.c.bf16 %v1854_v58, %v1854_v58 }
 0x3c6   : > { %v2125_v28 = vadd.f32 %v2124_v26, %v2123_v19  ;;  %v1708_v51 = vmul.f32 %v2824_v9, %v3492_v63  ;;  %v1659_v37 = vadd.f32 %v1658_v4, %v1657_v53  ;;  %v2106_v1 = vadd.f32 %v2105_v40, %v2104_v25  ;;  %v1753_v19 = vpop.permute.xlu1 %1752 }
 0x3c7   : > { %v1858_v56 = vrot.slane %v1857_v2, 2  ;;  %v1676_v41 = vrot.slane %v1675_v33, 1  ;;  %v2110_v14 = vrot.slane %v2109_v10, 4  ;;  %v3563_v11 = vadd.f32 %v1874_v61, %v1873_v46 }
 0x3c8   : > { %v2126_v3 = vrot.slane %v2125_v28, 2  ;;  %v1790_v5 = vmul.f32 %v1757_v52, %v1708_v51  ;;  %v1660_v35 = vrot.slane %v1659_v37, 2  ;;  %v2057_v38 = vmul.f32 %v1708_v51, %v3235_v21 }
 0x3c9   : > { %v1859_v39 = vadd.f32 %v1858_v56, %v1857_v2  ;;  %v1677_v16 = vadd.f32 %v1676_v41, %v1675_v33  ;;  %v2111_v54 = vadd.f32 %v2110_v14, %v2109_v10  ;;  %v3566_v57 = vunpack.c.l.b16 %v1912_v60 }
 0x3ca   : > { %v2127_v58 = vadd.f32 %v2126_v3, %v2125_v28  ;;  %v1890_v63 = vsel %vm843_vm0, %v1790_v5, 0.0  ;;  %v1661_v53 = vadd.f32 %v1660_v35, %v1659_v37  ;;  %v2107_v46 = vrot.slane %v2106_v1, 1  ;;  %v1755_v5 = vpop.permute.xlu1 %1754 }
 0x3cb   : > { %v1860_v23 = vrot.slane %v1859_v39, 1  ;;  %v1891_v25 = vrot.slane %v1890_v63, 4  ;;  %2827 = vrcp.f32 %v1677_v16  ;;  %v1915_v61 = vpack.c.bf16 %v3563_v11, %v3563_v11 }
 0x3cc   : > { %v1662_v26 = vrot.slane %v1661_v53, 1  ;;  %v2112_v4 = vrot.slane %v2111_v54, 2  ;;  %v2141_v21 = vadd.f32 %v2140_v47, %v3536_v36  ;;  %v2128_v2 = vrot.slane %v2127_v58, 1 }
 0x3cd   : > { %v2826_v9 = vpop.eup %2825  ;;  %v3572_v52 = vadd.f32 %v1860_v23, %v1859_v39  ;;  %v1892_v33 = vadd.f32 %v1891_v25, %v1890_v63  ;;  %v2158_v40 = vsel %vm2059_vm3, %v2057_v38, 0.0  ;;  %v3579_v51 = vadd.f32 %v2135_v45, %v3512_v31 }
 0x3ce   : > { %v1706_v10 = vmul.f32 %v2826_v9, %v3518_v6  ;;  %v1663_v60 = vadd.f32 %v1662_v26, %v1661_v53  ;;  %v2113_v28 = vadd.f32 %v2112_v4, %v2111_v54  ;;  %v3581_v56 = vadd.f32 %v2107_v46, %v2106_v1 }
 0x3cf   : > { %v1893_v37 = vrot.slane %v1892_v33, 2  ;;  %v2142_v36 = vrot.slane %v2141_v21, 1  ;;  %v2159_v47 = vrot.slane %v2158_v40, 4  ;;  %v1913_v6 = vpack.c.bf16 %v3572_v52, %v3572_v52 }
 0x3d0   : > { %v1788_v41 = vmul.f32 %v1753_v19, %v1706_v10  ;;  %v2055_v14 = vmul.f32 %v1706_v10, %v3240_v30  ;;  %2829 = vrcp.f32 %v1663_v60  ;;  %v2114_v3 = vrot.slane %v2113_v28, 1 }
 0x3d1   : > { %v3586_v35 = vadd.f32 %v2128_v2, %v2127_v58  ;;  %v2160_v39 = vadd.f32 %v2159_v47, %v2158_v40  ;;  %v2172_v31 = vpack.c.bf16 %v3404_v12, %v3404_v12  ;;  %v3590_v45 = vadd.f32 %v1893_v37, %v1892_v33 }
 0x3d2   : > { %v1876_v1 = vsel %vm843_vm0, %v1788_v41, 0.0  ;;  %v2144_v38 = vsel %vm2059_vm3, %v2055_v14, 0.0  ;;  %v2115_v16 = vadd.f32 %v2114_v3, %v2113_v28  ;;  %v3594_v63 = vadd.f32 %v2142_v36, %v2141_v21 }
 0x3d3   : > { %v1877_v30 = vrot.slane %v1876_v1, 4  ;;  %v2145_v54 = vrot.slane %v2144_v38, 4  ;;  %v2161_v53 = vrot.slane %v2160_v39, 2  ;;  %v2173_v58 = vpack.c.bf16 %v3428_v18, %v3428_v18 }
 0x3d4   : > { %v2174_v19 = vpack.c.bf16 %v3509_v7, %v3509_v7  ;;  %v2175_v12 = vpack.c.bf16 %v3542_v22, %v3542_v22  ;;  %v2176_v23 = vpack.c.bf16 %v3546_v50, %v3546_v50  ;;  %v2177_v21 = vpack.c.bf16 %v3558_v29, %v3558_v29  ;;  %v1759_v22 = vpop.permute.xlu1 %1758 }
 0x3d5   : > { %v2828_v25 = vpop.eup %2827  ;;  %v1878_v46 = vadd.f32 %v1877_v30, %v1876_v1  ;;  %v2146_v26 = vadd.f32 %v2145_v54, %v2144_v38  ;;  %v2162_v4 = vadd.f32 %v2161_v53, %v2160_v39  ;;  %v2178_v18 = vpack.c.bf16 %v3581_v56, %v3581_v56 }
 0x3d6   : > { %v1709_v9 = vmul.f32 %v2828_v25, %v3534_v55  ;;  %v2179_v2 = vpack.c.bf16 %v2115_v16, %v2115_v16  ;;  %v2180_v7 = vpack.c.bf16 %v3552_v34, %v3552_v34  ;;  %v2181_v10 = vpack.c.bf16 %v3586_v35, %v3586_v35 }
 0x3d7   : > { %v1879_v33 = vrot.slane %v1878_v46, 2  ;;  %v2147_v40 = vrot.slane %v2146_v26, 2  ;;  %v2163_v50 = vrot.slane %v2162_v4, 1  ;;  %v2182_v55 = vpack.c.bf16 %v3579_v51, %v3579_v51 }
 0x3d8   : > { %v1791_v60 = vmul.f32 %v1759_v22, %v1709_v9  ;;  %v2058_v28 = vmul.f32 %v1709_v9, %v3250_v27  ;;  %v2183_v29 = vpack.c.bf16 %v3594_v63, %v3594_v63  ;;  %v2204_v36 = vunpack.c.l.b16 %v2172_v31 }
 0x3d9   : > { %v1880_v37 = vadd.f32 %v1879_v33, %v1878_v46  ;;  %v2148_v34 = vadd.f32 %v2147_v40, %v2146_v26  ;;  %v3618_v56 = vadd.f32 %v2163_v50, %v2162_v4  ;;  %v2205_v27 = vunpack.c.l.b16 %v2173_v58 }
 0x3da   : > { %v2830_v47 = vpop.eup %2829  ;;  %v1897_v41 = vsel %vm843_vm0, %v1791_v60, 0.0  ;;  %v2165_v14 = vsel %vm2059_vm3, %v2058_v28, 0.0  ;;  %v2206_v3 = vunpack.c.l.b16 %v2174_v19  ;;  %v2207_v31 = vunpack.c.l.b16 %v2175_v12 }
 0x3db   : > { %v1881_v35 = vrot.slane %v1880_v37, 1  ;;  %v1898_v39 = vrot.slane %v1897_v41, 4  ;;  %v1707_v51 = vmul.f32 %v2830_v47, %v3549_v24  ;;  %v2149_v1 = vrot.slane %v2148_v34, 1 }
 0x3dc   : > { %v2166_v38 = vrot.slane %v2165_v14, 4  ;;  %v2186_v16 = vpack.c.bf16 %v3618_v56, %v3618_v56  ;;  %v2208_v30 = vunpack.c.l.b16 %v2176_v23  ;;  %v2209_v58 = vunpack.c.l.b16 %v2177_v21 }
 0x3dd   : > { %v1899_v54 = vadd.f32 %v1898_v39, %v1897_v41  ;;  %v1789_v63 = vmul.f32 %v1755_v5, %v1707_v51  ;;  %v2056_v53 = vmul.f32 %v1707_v51, %v3245_v48  ;;  %v3626_v19 = vadd.f32 %v1881_v35, %v1880_v37 }
 0x3de   : > { %v2150_v25 = vadd.f32 %v2149_v1, %v2148_v34  ;;  %v2167_v24 = vadd.f32 %v2166_v38, %v2165_v14  ;;  %v2210_v46 = vunpack.c.l.b16 %v2178_v18  ;;  %v2211_v9 = vunpack.c.l.b16 %v2179_v2 }
 0x3df   : > { %v1883_v26 = vsel %vm843_vm0, %v1789_v63, 0.0  ;;  %v2151_v4 = vsel %vm2059_vm3, %v2056_v53, 0.0  ;;  %v2212_v22 = vunpack.c.l.b16 %v2180_v7  ;;  %v1900_v40 = vrot.slane %v1899_v54, 2 }
 0x3e0   : > { %v1884_v12 = vrot.slane %v1883_v26, 4  ;;  %v2152_v23 = vrot.slane %v2151_v4, 4  ;;  %v2168_v33 = vrot.slane %v2167_v24, 2  ;;  %v2184_v5 = vpack.c.bf16 %v2150_v25, %v2150_v25 }
 0x3e1   : > { %v2213_v48 = vunpack.c.l.b16 %v2181_v10  ;;  %v2214_v50 = vunpack.c.l.b16 %v2182_v55  ;;  %v2215_v21 = vunpack.c.l.b16 %v2183_v29  ;;  %v2220_v18 = vsel %vm1963_vm4, %v2205_v27, %v2204_v36 }
 0x3e2   : > { %v1885_v60 = vadd.f32 %v1884_v12, %v1883_v26  ;;  %v2153_v28 = vadd.f32 %v2152_v23, %v2151_v4  ;;  %v2169_v37 = vadd.f32 %v2168_v33, %v2167_v24  ;;  %v2216_v34 = vunpack.c.l.b16 %v2184_v5 }
 0x3e3   : > { %v2227_v47 = vsel %vm1963_vm4, %v2213_v48, %v2212_v22  ;;  %v1833_v2 = vadd.f32 %v1832_v59, %v3494_v49  ;;  %v1839_v7 = vrot.slane %v3467_v13, 1  ;;  %v2221_v10 = vsel %vm1965_vm5, %v2206_v3, %v2220_v18 }
 0x3e4   : > { %v1886_v41 = vrot.slane %v1885_v60, 2  ;;  %v2154_v14 = vrot.slane %v2153_v28, 2  ;;  %v2170_v35 = vrot.slane %v2169_v37, 1  ;;  %v2222_v55 = vsel %vm1967_vm6, %v2207_v31, %v2221_v10 }
 0x3e5   : > { %v2228_v29 = vsel %vm1965_vm5, %v2214_v50, %v2227_v47  ;;  %v1840_v39 = vadd.f32 %v1839_v7, %v3467_v13  ;;  %v1845_v36 = vadd.f32 %v1844_v8, %v3470_v43  ;;  %v2223_v59 = vsel %vm1969_vm7, %v2208_v30, %v2222_v55 }
 0x3e6   : > { %v1887_v27 = vadd.f32 %v1886_v41, %v1885_v60  ;;  %v2155_v51 = vadd.f32 %v2154_v14, %v2153_v28  ;;  %v2171_v49 = vadd.f32 %v2170_v35, %v2169_v37  ;;  %v2224_v1 = vsel %vm1971_vm8, %v2209_v58, %v2223_v59 }
 0x3e7   : > { %v2229_v38 = vsel %vm1967_vm6, %v2215_v21, %v2228_v29  ;;  %v1846_v3 = vrot.slane %v1845_v36, 1  ;;  %v1895_v31 = vrot.slane %v3590_v45, 1  ;;  %v2225_v13 = vsel %vm1973_vm9, %v2210_v46, %v2224_v1 }
 0x3e8   : > { %v1888_v63 = vrot.slane %v1887_v27, 1  ;;  %v2156_v53 = vrot.slane %v2155_v51, 1  ;;  %v2187_v25 = vpack.c.bf16 %v2171_v49, %v2171_v49  ;;  %v2226_v24 = vsel %vm1975_vm10, %v2211_v9, %v2225_v13 }
 0x3e9   : > { %v2230_v43 = vsel %vm1969_vm7, %v2216_v34, %v2229_v38  ;;  %v1847_v8 = vadd.f32 %v1846_v3, %v1845_v36  ;;  %v1896_v26 = vadd.f32 %v1895_v31, %v3590_v45  ;;  %v1916_v30 = vpack.c.bf16 %v3626_v19, %v3626_v19  ;;  %v2832_v36 = vld [vmem:[%s3730_s10 + $0x8] sm:$0xff]  }
 0x3ea   : > { %v2157_v58 = vadd.f32 %v2156_v53, %v2155_v51  ;;  %v1889_v4 = vadd.f32 %v1888_v63, %v1887_v27  ;;  %v1901_v22 = vadd.f32 %v1900_v40, %v1899_v54  ;;  %v1958_v12 = vunpack.c.l.b16 %v1915_v61  ;;  %v1710_v63 = vld [vmem:[%s431_s30] sm:$0xff] }
 0x3eb   : > { %v1956_v46 = vunpack.c.l.b16 %v1913_v6  ;;  %v1909_v9 = vpack.c.bf16 %v1833_v2, %v1833_v2  ;;  %v1910_v23 = vpack.c.bf16 %v1840_v39, %v1840_v39  ;;  %v2218_v45 = vunpack.c.l.b16 %v2186_v16  ;;  %v2831_v39 = vld [vmem:[%s3730_s10] sm:$0xff]  }
 0x3ec   : > { %v2185_v33 = vpack.c.bf16 %v2157_v58, %v2157_v58  ;;  %v1902_v5 = vrot.slane %v1901_v22, 1  ;;  %v1917_v19 = vpack.c.bf16 %v1889_v4, %v1889_v4  ;;  %v2219_v48 = vunpack.c.l.b16 %v2187_v25 }
 0x3ed   : > { %v1911_v50 = vpack.c.bf16 %v1847_v8, %v1847_v8  ;;  %v1918_v54 = vpack.c.bf16 %v1896_v26, %v1896_v26  ;;  %v1951_v11 = vunpack.c.l.b16 %v1908_v15  ;;  %v1952_v52 = vunpack.c.l.b16 %v1909_v9 }
 0x3ee   : > { %v2217_v61 = vunpack.c.l.b16 %v2185_v33  ;;  %v1903_v40 = vadd.f32 %v1902_v5, %v1901_v22  ;;  %v1959_v6 = vunpack.c.l.b16 %v1916_v30  ;;  %v1953_v21 = vunpack.c.l.b16 %v1910_v23 }
 0x3ef   : > { %v1960_v60 = vunpack.c.l.b16 %v1917_v19  ;;  %v1964_v56 = vsel %vm1963_vm4, %v3435_v17, %v3409_v44  ;;  %v1977_v16 = vsel %vm1963_vm4, %v1956_v46, %v3566_v57  ;;  %v1954_v18 = vunpack.c.l.b16 %v1911_v50 }
 0x3f0   : > { %v2231_v28 = vsel %vm1971_vm8, %v2217_v61, %v2230_v43  ;;  %v1919_v37 = vpack.c.bf16 %v1903_v40, %v1903_v40  ;;  %v1966_v0 = vsel %vm1965_vm5, %v3406_v42, %v1964_v56  ;;  %v1978_v15 = vsel %vm1965_vm5, %v3544_v32, %v1977_v16  ;;  %v1711_v43 = vld [vmem:[%s431_s30 + $0x8] sm:$0xff] }
 0x3f1   : > { %v2232_v34 = vsel %vm1973_vm9, %v2218_v45, %v2231_v28  ;;  %v1968_v47 = vsel %vm1967_vm6, %v3417_v62, %v1966_v0  ;;  %v1979_v44 = vsel %vm1967_vm6, %v1958_v12, %v1978_v15  ;;  %v1961_v57 = vunpack.c.l.b16 %v1918_v54 }
 0x3f2   : > { %v2233_v17 = vsel %vm1975_vm10, %v2219_v48, %v2232_v34  ;;  %v1970_v2 = vsel %vm1969_vm7, %v1951_v11, %v1968_v47  ;;  %v1980_v7 = vsel %vm1969_vm7, %v1959_v6, %v1979_v44  ;;  %v1962_v42 = vunpack.c.l.b16 %v1919_v37 }
 0x3f3   : > { %v2234_v41 = vpack.c.b16 %v2233_v17, %v2226_v24  ;;  %v1972_v14 = vsel %vm1971_vm8, %v1952_v52, %v1970_v2  ;;  %v1981_v32 = vsel %vm1971_vm8, %v1960_v60, %v1980_v7 }
 0x3f4   : > { %v1974_v35 = vsel %vm1973_vm9, %v1953_v21, %v1972_v14  ;;  %v1982_v10 = vsel %vm1973_vm9, %v1961_v57, %v1981_v32 }
 0x3f5   : > { %2235 = vrot.lane.b32.xlu0 %v2234_v41, %s2845_s28  ;;  %v1976_v62 = vsel %vm1975_vm10, %v1954_v18, %v1974_v35  ;;  %v1983_v55 = vsel %vm1975_vm10, %v1962_v42, %v1982_v10 }
 0x3f6   : > { %v1984_v29 = vpack.c.b16 %v1983_v55, %v1976_v62 }
 0x3f8   : > { %2573 = vmatmul.mubr.msk.bf16.vlgmr.msra.gmra.mrb[20].mxu1 %vm843_vm0, %v1984_v29 }
 0x3f9   : > { %2577 = vmatpush3.bf16.msra.mxu1 %v2831_v39  ;;  %2580 = vmatprep.mubr.msk.bf16.mxu1 %vm2847_vm2, %v2846_v20 }
 0x3fa   : > { %2578 = vmatprep.subr.bf16.mxu1 %v2846_v20  ;;  %v2408_v20 = vld [vmem:[%s3731_s11] ss:$0 sm:$0xff] }
 0x3fd   : > { %2579 = vmatpush3.bf16.msra.mxu1 %v2832_v36 }
 0x467   : > { %v2236_v27 = vpop.permute.xlu0 %2235 }
 0x468   : > { %2581 = vmatmul.mubr.msk.bf16.vlgmr.msra.gmra.mrb[24].mxu1 %vm843_vm0, %v2236_v27 }
 0x4cb   : > { %v2034_v51 = vpop.f32.mrb[20].mxu1 }
 0x4cc   : > { %v2574_v49 = vpop.f32.mrb[21].mxu1  ;;  %v2035_v26 = vadd.f32 %v2408_v20, %v2034_v51 }
 0x4cd   : > { %v2037_v59 = vpop.f32.mrb[22].mxu1 }
 0x4ce   : > { %v2575_v1 = vpop.f32.mrb[23].mxu1  ;;  %v2038_v30 = vadd.f32 %v2408_v20, %v2037_v59  ;;  %v2041_v58 = vadd.f32 %v2035_v26, %v1710_v63 }
 0x4d0   : > { %v2042_v22 = vadd.f32 %v2038_v30, %v1711_v43 }
 0x53b   : > { %v2274_v38 = vpop.f32.mrb[24].mxu1 }
 0x53c   : > { %v2275_v3 = vadd.f32 %v2408_v20, %v2274_v38  ;;  %v2582_v31 = vpop.f32.mrb[25].mxu1 }
 0x53d   : > { %v2277_v53 = vpop.f32.mrb[26].mxu1 }
 0x53e   : > { %v2281_v25 = vadd.f32 %v2275_v3, %v1710_v63  ;;  %v2278_v13 = vadd.f32 %v2408_v20, %v2277_v53  ;;  %v2583_v24 = vpop.f32.mrb[27].mxu1 }
 0x540   : > { %v2282_v8 = vadd.f32 %v2278_v13, %v1711_v43  ;;  %2285 = vrot.lane.b32.xlu1 %v2281_v25, %s2844_s26 }
 0x542   : > { %2287 = vrot.lane.b32.xlu0 %v2282_v8, %s2844_s26 }
 0x5b2   : > { %v2286_v4 = vpop.permute.xlu1 %2285 }
 0x5b3   : > { %v2291_v12 = vsel %vm843_vm0, %v2041_v58, %v2286_v4 }
 0x5b4   : > { %v2293_v46 = vsel %vm1405_vm1, %v2291_v12, 0.0  ;;  %v2288_v9 = vpop.permute.xlu0 %2287 }
 0x5b5   : > { %2295 = vst [vmem:[%s437_s16] sm:$0xff] %v2293_v46  ;;  %v2292_v23 = vsel %vm843_vm0, %v2042_v22, %v2288_v9 }
 0x5b6   : > { %v2294_v33 = vsel %vm1405_vm1, %v2292_v23, 0.0 }
 0x5b7   : > { %2296 = vst [vmem:[%s437_s16 + $0x8] sm:$0xff] %v2294_v33 }
 0x5b8 PF: > { %s22_s21 = sadd.s32 1, %s2839_s21  }
 0x5b9   : > { %p19_p5 = scmp.ge.s32.totalorder %s22_s21, 4  }
 0x5bb   :  { %21 = sbr.rel (!%p19_p5) target bundleno = 1 (0x1), region = 101 }

</bundles_post_ra>
